<compile_context>
chip_gen: v7x
topology: tpu7x:2x2x1
jax: 0.10.0
libtpu: 0.0.40
codegen_flags: <defaults>
</compile_context>

<pallas_src>
import jax
import jax.numpy as jnp
from jax.experimental import pallas as pl
from jax.experimental.pallas import tpu as pltpu

NUM_CONV4 = 120
HIDDEN_SIZE = NUM_CONV4
INPUT_SIZE = NUM_CONV4
NUM_CAT = 10
OUTPUT_SIZE = NUM_CAT

# Lane-dense padded sizes.
INPUT_PAD = 128
HIDDEN_PAD = 128
OUT_PAD = 128
NFUSED = HIDDEN_PAD + OUT_PAD          # 256-wide fused [hidden | logits] block
NEG_INF = -1e30                        # padded logit lanes -> exp() == 0

MAX_T_BLK = 8                          # timesteps folded into each grid step
MAX_B_BLK = 128                        # batch rows per (parallel) batch block


def _round_up(x, m):
    return (x + m - 1) // m * m


def _pick_t_blk(T):
    for cand in (MAX_T_BLK, 4, 2, 1):
        if T % cand == 0:
            return cand
    return 1


# -----------------------------------------------------------------------------
# Kernel: grid=(batch_blocks, time_blocks); recurrence carried in VMEM scratch.
# -----------------------------------------------------------------------------
def rnn_seq_kernel(x_ref, h0_ref, wx_ref, wh_ref, b_ref,
                   logp_ref, hlast_ref, h_scratch, xw_scratch):
    t_blk, b_blk, _ = x_ref.shape

    # New batch block -> load its initial hidden (bf16 carry; bit-identical to
    # casting the fp32 hidden right before the recurrent matmul).
    @pl.when(pl.program_id(1) == 0)
    def _():
        h_scratch[...] = h0_ref[...].astype(jnp.bfloat16)

    # ---- Phase 1 (off the serial chain): project all T_BLK inputs at once.
    #      xw[t] = x[t] @ [W_i2h | W_i2o](input rows) + bias
    #      One (t_blk*b_blk, 128) @ (128, 256) bf16 MXU matmul, fp32 accumulate.
    x2 = x_ref[...].reshape(t_blk * b_blk, INPUT_PAD)
    xw_scratch[...] = (
        jnp.dot(x2, wx_ref[...], preferred_element_type=jnp.float32)
        + b_ref[...]                               # (1, 256) broadcast; includes NEG_INF pads
    )

    # ---- Phase 2: the serial recurrence, fully unrolled with static indices
    #      (single basic block -> scheduler overlaps phase-1 work freely).
    wh = wh_ref[...]                               # hoisted weight read (bf16, resident)
    h = h_scratch[...]                             # (b_blk, HIDDEN_PAD) bf16
    new_h32 = None
    for t in range(t_blk):
        acc = (xw_scratch[pl.ds(t * b_blk, b_blk), :]
               + jnp.dot(h, wh, preferred_element_type=jnp.float32))   # (b_blk, 256) fp32
        new_h32 = acc[:, :HIDDEN_PAD]              # fp32 hidden half (tile-aligned slice)
        logits = acc[:, HIDDEN_PAD:]               # fp32 logits; padded lanes ~ -1e30

        # LogSoftmax(dim=1) in fp32 (v5e has no bf16 VPU/EUP).  exp(-huge) == 0.
        m = jnp.max(logits, axis=1, keepdims=True)
        shifted = logits - m
        lse = jnp.log(jnp.sum(jnp.exp(shifted), axis=1, keepdims=True))
        logp_ref[t] = (shifted - lse).astype(logp_ref.dtype)

        h = new_h32.astype(jnp.bfloat16)           # bf16 carry for next step

    h_scratch[...] = h                             # carry across time-grid steps
    # Final hidden from the fp32 value (pre-cast).  Constant block index per
    # batch block -> only the last time-block's value reaches HBM.
    hlast_ref[...] = new_h32.astype(hlast_ref.dtype)


# -----------------------------------------------------------------------------
# Wrappers
# -----------------------------------------------------------------------------
def rnn_forward_seq(xs, h0, packed_params):
    """Run T recurrent steps in one pallas_call.

    xs: (T, B, INPUT_SIZE) fp32, h0: (B, HIDDEN_SIZE) fp32.
    Returns (log_probs (T, B, OUTPUT_SIZE), final_hidden (B, HIDDEN_SIZE)).
    """
    T, B, _ = xs.shape
    wx, wh, bias = packed_params

    t_blk = _pick_t_blk(T)
    b_pad = _round_up(B, 16)                       # full bf16 sublane packing
    b_blk = min(b_pad, MAX_B_BLK)
    b_pad = _round_up(b_pad, b_blk)

    # Pad activations to lane-dense widths (bf16 matmul inputs, fp32 h0).
    # TODO(synk): for hot step-by-step sampling loops, expose a padded-layout
    # fast path so this pad/slice is not paid per call.
    x_pad = jnp.zeros((T, b_pad, INPUT_PAD), jnp.bfloat16)
    x_pad = x_pad.at[:, :B, :INPUT_SIZE].set(xs.astype(jnp.bfloat16))
    h_pad = jnp.zeros((b_pad, HIDDEN_PAD), jnp.float32)
    h_pad = h_pad.at[:B, :HIDDEN_SIZE].set(h0)

    grid = (b_pad // b_blk, T // t_blk)            # (parallel batch, arbitrary time)

    logp_pad, hlast_pad = pl.pallas_call(
        rnn_seq_kernel,
        out_shape=(
            jax.ShapeDtypeStruct((T, b_pad, OUT_PAD), jnp.float32),
            jax.ShapeDtypeStruct((b_pad, HIDDEN_PAD), jnp.float32),
        ),
        grid_spec=pltpu.PrefetchScalarGridSpec(
            num_scalar_prefetch=0,
            grid=grid,
            in_specs=[
                # x block marches with (t, b); auto-pipelined behind compute.
                pl.BlockSpec((t_blk, b_blk, INPUT_PAD), lambda b, t: (t, b, 0)),
                # h0 per batch block; weights/bias constant -> DMA'd once, resident.
                pl.BlockSpec((b_blk, HIDDEN_PAD), lambda b, t: (b, 0)),
                pl.BlockSpec((INPUT_PAD, NFUSED), lambda b, t: (0, 0)),
                pl.BlockSpec((HIDDEN_PAD, NFUSED), lambda b, t: (0, 0)),
                pl.BlockSpec((1, NFUSED), lambda b, t: (0, 0)),
            ],
            out_specs=[
                pl.BlockSpec((t_blk, b_blk, OUT_PAD), lambda b, t: (t, b, 0)),
                pl.BlockSpec((b_blk, HIDDEN_PAD), lambda b, t: (b, 0)),
            ],
            scratch_shapes=[
                pltpu.VMEM((b_blk, HIDDEN_PAD), jnp.bfloat16),       # recurrent h
                pltpu.VMEM((t_blk * b_blk, NFUSED), jnp.float32),    # xw block
            ],
        ),
        compiler_params=pltpu.CompilerParams(
            # batch blocks are independent (megacore-shardable on v7x);
            # time is a true recurrence.
            dimension_semantics=("parallel", "arbitrary")),
    )(x_pad, h_pad, wx, wh, bias)

    log_probs = logp_pad[:, :B, :OUTPUT_SIZE]
    h_final = hlast_pad[:B, :HIDDEN_SIZE]
    return log_probs, h_final


def rnn_forward(x, h, packed_params):
    """One RNN.forward(input, hidden) step -> (log_probs, new_hidden)."""
    logp, h_new = rnn_forward_seq(x[None], h, packed_params)
    return logp[0], h_new


# -----------------------------------------------------------------------------
# Parameters
# -----------------------------------------------------------------------------
def init_params(key):
    """nn.Linear-style init; weights stored transposed (in_features, out)."""
    k = jax.random.split(key, 4)
    fan_in = INPUT_SIZE + HIDDEN_SIZE
    bound = 1.0 / (fan_in ** 0.5)
    w_i2h = jax.random.uniform(k[0], (fan_in, HIDDEN_SIZE), jnp.float32, -bound, bound)
    b_i2h = jax.random.uniform(k[1], (HIDDEN_SIZE,), jnp.float32, -bound, bound)
    w_i2o = jax.random.uniform(k[2], (fan_in, OUTPUT_SIZE), jnp.float32, -bound, bound)
    b_i2o = jax.random.uniform(k[3], (OUTPUT_SIZE,), jnp.float32, -bound, bound)
    return w_i2h, b_i2h, w_i2o, b_i2o


def pack_params(w_i2h, b_i2h, w_i2o, b_i2o):
    """Fuse+pad i2h/i2o into (Wx bf16, Wh bf16, bias fp32) for the kernel.

    Wx holds the input-rows of both linears side by side (hidden -> lanes
    [0,128), logits -> lanes [128,256)); Wh holds the hidden-rows.  Padded
    logit lanes get a -1e30 bias so they vanish under log-softmax.
    """
    wx = jnp.zeros((INPUT_PAD, NFUSED), jnp.float32)
    wh = jnp.zeros((HIDDEN_PAD, NFUSED), jnp.float32)
    wx = wx.at[:INPUT_SIZE, :HIDDEN_SIZE].set(w_i2h[:INPUT_SIZE])
    wx = wx.at[:INPUT_SIZE, HIDDEN_PAD:HIDDEN_PAD + OUTPUT_SIZE].set(w_i2o[:INPUT_SIZE])
    wh = wh.at[:HIDDEN_SIZE, :HIDDEN_SIZE].set(w_i2h[INPUT_SIZE:])
    wh = wh.at[:HIDDEN_SIZE, HIDDEN_PAD:HIDDEN_PAD + OUTPUT_SIZE].set(w_i2o[INPUT_SIZE:])

    bias = jnp.zeros((1, NFUSED), jnp.float32)
    bias = bias.at[0, :HIDDEN_SIZE].set(b_i2h)
    bias = bias.at[0, HIDDEN_PAD:HIDDEN_PAD + OUTPUT_SIZE].set(b_i2o)
    bias = bias.at[0, HIDDEN_PAD + OUTPUT_SIZE:].set(NEG_INF)

    return wx.astype(jnp.bfloat16), wh.astype(jnp.bfloat16), bias


# -----------------------------------------------------------------------------
# fp32 reference (mirrors the PyTorch module exactly)
# -----------------------------------------------------------------------------
def reference_step(x, h, raw_params):
    w_i2h, b_i2h, w_i2o, b_i2o = raw_params
    combined = jnp.concatenate([x, h], axis=1)
    hidden = combined @ w_i2h + b_i2h
    logits = combined @ w_i2o + b_i2o
    return jax.nn.log_softmax(logits, axis=1), hidden


if __name__ == "__main__":
    key = jax.random.PRNGKey(0)
    kp, kx = jax.random.split(key)
    raw_params = init_params(kp)
    packed_params = pack_params(*raw_params)

    # Small but sublane-full batch (multiple of 16 for bf16 packing); T chosen
    # so the kernel runs 2 time-grid-steps (exercises the cross-step carry).
    B, T = 16, 16
    xs = jax.random.normal(kx, (T, B, INPUT_SIZE), jnp.float32)
    h0 = jnp.zeros((B, HIDDEN_SIZE), jnp.float32)      # RNN.initHidden()

    # Sequence rollout: one pallas_call, T_BLK steps per grid iteration.
    log_probs, h_final = rnn_forward_seq(xs, h0, packed_params)
    log_probs = jax.block_until_ready(log_probs)
    h_final = jax.block_until_ready(h_final)

    assert log_probs.shape == (T, B, OUTPUT_SIZE)
    assert h_final.shape == (B, HIDDEN_SIZE)

    # fp32 reference rollout (bf16 matmul inputs -> loose tolerance).
    ref_lp = []
    ref_h = h0
    for t in range(T):
        lp, ref_h = reference_step(xs[t], ref_h, raw_params)
        ref_lp.append(lp)
    ref_lp = jnp.stack(ref_lp)

    assert jnp.allclose(log_probs, ref_lp, atol=5e-2, rtol=5e-2), \
        float(jnp.max(jnp.abs(log_probs - ref_lp)))
    assert jnp.allclose(h_final, ref_h, atol=5e-2, rtol=5e-2), \
        float(jnp.max(jnp.abs(h_final - ref_h)))

    # Single-step API matching RNN.forward(input, hidden).
    out1, h1 = rnn_forward(xs[0], h0, packed_params)
    ref_out1, ref_h1 = reference_step(xs[0], h0, raw_params)
    assert jnp.allclose(out1, ref_out1, atol=2e-2, rtol=2e-2)
    assert jnp.allclose(h1, ref_h1, atol=2e-2, rtol=2e-2)

    print("KERNEL_OK")
</pallas_src>

<mosaic_0001>
module attributes {stable_mosaic.version = 11 : i64} {
  func.func @rnn_seq_kernel(%arg0: i32, %arg1: i32, %arg2: memref<8x16x128xbf16, #tpu.memory_space<vmem>>, %arg3: memref<16x128xf32, #tpu.memory_space<vmem>>, %arg4: memref<128x256xbf16, #tpu.memory_space<vmem>>, %arg5: memref<128x256xbf16, #tpu.memory_space<vmem>>, %arg6: memref<1x256xf32, #tpu.memory_space<vmem>>, %arg7: memref<8x16x128xf32, #tpu.memory_space<vmem>>, %arg8: memref<16x128xf32, #tpu.memory_space<vmem>>, %arg9: memref<16x128xbf16, #tpu.memory_space<vmem>>, %arg10: memref<128x256xf32, #tpu.memory_space<vmem>>) attributes {dimension_semantics = [#tpu.dimension_semantics<parallel>, #tpu.dimension_semantics<arbitrary>], iteration_bounds = array<i64: 1, 2>, scalar_prefetch = 0 : i64, scratch_operands = 2 : i64, tpu.core_type = #tpu.core_type<tc>, window_params = [{transform_indices = @transform_0, window_bounds = array<i64: 8, 16, 128>}, {transform_indices = @transform_1, window_bounds = array<i64: 16, 128>}, {pipeline_mode = #tpu.pipeline_mode<synchronous>, transform_indices = @transform_2, window_bounds = array<i64: 128, 256>}, {pipeline_mode = #tpu.pipeline_mode<synchronous>, transform_indices = @transform_3, window_bounds = array<i64: 128, 256>}, {pipeline_mode = #tpu.pipeline_mode<synchronous>, transform_indices = @transform_4, window_bounds = array<i64: 1, 256>}, {transform_indices = @transform_5, window_bounds = array<i64: 8, 16, 128>}, {transform_indices = @transform_6, window_bounds = array<i64: 16, 128>}]} {
    %c0_i32 = arith.constant 0 : i32
    %0 = arith.cmpi eq, %arg1, %c0_i32 : i32
    %1 = arith.extui %0 : i1 to i32
    %c0_i32_0 = arith.constant 0 : i32
    %2 = arith.cmpi ne, %1, %c0_i32_0 : i32
    scf.if %2 {
      %c0_67 = arith.constant 0 : index
      %c0_68 = arith.constant 0 : index
      %167 = vector.load %arg3[%c0_67, %c0_68] : memref<16x128xf32, #tpu.memory_space<vmem>>, vector<16x128xf32>
      %168 = arith.truncf %167 : vector<16x128xf32> to vector<16x128xbf16>
      %c0_69 = arith.constant 0 : index
      %c0_70 = arith.constant 0 : index
      %169 = vector.load %arg9[%c0_69, %c0_70] : memref<16x128xbf16, #tpu.memory_space<vmem>>, vector<16x128xbf16>
      tpu.vector_store %arg9[%c0_69, %c0_70], %168 {strides = array<i32>} : memref<16x128xbf16, #tpu.memory_space<vmem>>, vector<16x128xbf16>,
    } else {
    }
    %c0 = arith.constant 0 : index
    %c0_1 = arith.constant 0 : index
    %c0_2 = arith.constant 0 : index
    %3 = vector.load %arg2[%c0, %c0_1, %c0_2] : memref<8x16x128xbf16, #tpu.memory_space<vmem>>, vector<8x16x128xbf16>
    %4 = vector.shape_cast %3 : vector<8x16x128xbf16> to vector<128x128xbf16>
    %c0_3 = arith.constant 0 : index
    %c0_4 = arith.constant 0 : index
    %5 = vector.load %arg4[%c0_3, %c0_4] : memref<128x256xbf16, #tpu.memory_space<vmem>>, vector<128x256xbf16>
    %cst = arith.constant dense<0.000000e+00> : vector<128x256xf32>
    %6 = tpu.matmul %4, %5, %cst {dimension_numbers = #tpu.dot_dimension_numbers<[1], [0], [0], [1], [0, 0, 1, 1], [], []>} : vector<128x128xbf16>, vector<128x256xbf16>, vector<128x256xf32> -> vector<128x256xf32>
    %c0_5 = arith.constant 0 : index
    %c0_6 = arith.constant 0 : index
    %7 = vector.load %arg6[%c0_5, %c0_6] : memref<1x256xf32, #tpu.memory_space<vmem>>, vector<1x256xf32>
    %8 = vector.broadcast %7 : vector<1x256xf32> to vector<128x256xf32>
    %9 = arith.addf %6, %8 : vector<128x256xf32>
    %c0_7 = arith.constant 0 : index
    %c0_8 = arith.constant 0 : index
    %10 = vector.load %arg10[%c0_7, %c0_8] : memref<128x256xf32, #tpu.memory_space<vmem>>, vector<128x256xf32>
    tpu.vector_store %arg10[%c0_7, %c0_8], %9 {strides = array<i32>} : memref<128x256xf32, #tpu.memory_space<vmem>>, vector<128x256xf32>,
    %c0_9 = arith.constant 0 : index
    %c0_10 = arith.constant 0 : index
    %11 = vector.load %arg5[%c0_9, %c0_10] : memref<128x256xbf16, #tpu.memory_space<vmem>>, vector<128x256xbf16>
    %c0_11 = arith.constant 0 : index
    %c0_12 = arith.constant 0 : index
    %12 = vector.load %arg9[%c0_11, %c0_12] : memref<16x128xbf16, #tpu.memory_space<vmem>>, vector<16x128xbf16>
    %c0_13 = arith.constant 0 : index
    %c0_14 = arith.constant 0 : index
    %13 = vector.load %arg10[%c0_13, %c0_14] : memref<128x256xf32, #tpu.memory_space<vmem>>, vector<16x256xf32>
    %cst_15 = arith.constant dense<0.000000e+00> : vector<16x256xf32>
    %14 = tpu.matmul %12, %11, %cst_15 {dimension_numbers = #tpu.dot_dimension_numbers<[1], [0], [0], [1], [0, 0, 1, 1], [], []>} : vector<16x128xbf16>, vector<128x256xbf16>, vector<16x256xf32> -> vector<16x256xf32>
    %15 = arith.addf %13, %14 : vector<16x256xf32>
    %16 = vector.extract_strided_slice %15 {offsets = [0, 0], sizes = [16, 128], strides = [1, 1]} : vector<16x256xf32> to vector<16x128xf32>
    %17 = vector.extract_strided_slice %15 {offsets = [0, 128], sizes = [16, 128], strides = [1, 1]} : vector<16x256xf32> to vector<16x128xf32>
    %cst_16 = arith.constant dense<0xFF800000> : vector<16xf32>
    %18 = vector.multi_reduction <maximumf>, %17, %cst_16 [1] : vector<16x128xf32> to vector<16xf32>
    %19 = vector.shape_cast %18 : vector<16xf32> to vector<16x1xf32>
    %20 = vector.broadcast %19 : vector<16x1xf32> to vector<16x128xf32>
    %21 = arith.subf %17, %20 : vector<16x128xf32>
    %22 = math.exp %21 : vector<16x128xf32>
    %cst_17 = arith.constant dense<0.000000e+00> : vector<16xf32>
    %23 = vector.multi_reduction <add>, %22, %cst_17 [1] : vector<16x128xf32> to vector<16xf32>
    %24 = vector.shape_cast %23 : vector<16xf32> to vector<16x1xf32>
    %25 = math.log %24 : vector<16x1xf32>
    %26 = vector.broadcast %25 : vector<16x1xf32> to vector<16x128xf32>
    %27 = arith.subf %21, %26 : vector<16x128xf32>
    %c0_18 = arith.constant 0 : index
    %c0_19 = arith.constant 0 : index
    %c0_20 = arith.constant 0 : index
    %28 = vector.load %arg7[%c0_18, %c0_19, %c0_20] : memref<8x16x128xf32, #tpu.memory_space<vmem>>, vector<1x16x128xf32>
    %29 = vector.shape_cast %28 : vector<1x16x128xf32> to vector<16x128xf32>
    %30 = vector.shape_cast %27 : vector<16x128xf32> to vector<1x16x128xf32>
    tpu.vector_store %arg7[%c0_18, %c0_19, %c0_20], %30 {strides = array<i32>} : memref<8x16x128xf32, #tpu.memory_space<vmem>>, vector<1x16x128xf32>,
    %31 = arith.truncf %16 : vector<16x128xf32> to vector<16x128xbf16>
    %c16 = arith.constant 16 : index
    %c0_21 = arith.constant 0 : index
    %32 = vector.load %arg10[%c16, %c0_21] : memref<128x256xf32, #tpu.memory_space<vmem>>, vector<16x256xf32>
    %cst_22 = arith.constant dense<0.000000e+00> : vector<16x256xf32>
    %33 = tpu.matmul %31, %11, %cst_22 {dimension_numbers = #tpu.dot_dimension_numbers<[1], [0], [0], [1], [0, 0, 1, 1], [], []>} : vector<16x128xbf16>, vector<128x256xbf16>, vector<16x256xf32> -> vector<16x256xf32>
    %34 = arith.addf %32, %33 : vector<16x256xf32>
    %35 = vector.extract_strided_slice %34 {offsets = [0, 0], sizes = [16, 128], strides = [1, 1]} : vector<16x256xf32> to vector<16x128xf32>
    %36 = vector.extract_strided_slice %34 {offsets = [0, 128], sizes = [16, 128], strides = [1, 1]} : vector<16x256xf32> to vector<16x128xf32>
    %cst_23 = arith.constant dense<0xFF800000> : vector<16xf32>
    %37 = vector.multi_reduction <maximumf>, %36, %cst_23 [1] : vector<16x128xf32> to vector<16xf32>
    %38 = vector.shape_cast %37 : vector<16xf32> to vector<16x1xf32>
    %39 = vector.broadcast %38 : vector<16x1xf32> to vector<16x128xf32>
    %40 = arith.subf %36, %39 : vector<16x128xf32>
    %41 = math.exp %40 : vector<16x128xf32>
    %cst_24 = arith.constant dense<0.000000e+00> : vector<16xf32>
    %42 = vector.multi_reduction <add>, %41, %cst_24 [1] : vector<16x128xf32> to vector<16xf32>
    %43 = vector.shape_cast %42 : vector<16xf32> to vector<16x1xf32>
    %44 = math.log %43 : vector<16x1xf32>
    %45 = vector.broadcast %44 : vector<16x1xf32> to vector<16x128xf32>
    %46 = arith.subf %40, %45 : vector<16x128xf32>
    %c1 = arith.constant 1 : index
    %c0_25 = arith.constant 0 : index
    %c0_26 = arith.constant 0 : index
    %47 = vector.load %arg7[%c1, %c0_25, %c0_26] : memref<8x16x128xf32, #tpu.memory_space<vmem>>, vector<1x16x128xf32>
    %48 = vector.shape_cast %47 : vector<1x16x128xf32> to vector<16x128xf32>
    %49 = vector.shape_cast %46 : vector<16x128xf32> to vector<1x16x128xf32>
    tpu.vector_store %arg7[%c1, %c0_25, %c0_26], %49 {strides = array<i32>} : memref<8x16x128xf32, #tpu.memory_space<vmem>>, vector<1x16x128xf32>,
    %50 = arith.truncf %35 : vector<16x128xf32> to vector<16x128xbf16>
    %c32 = arith.constant 32 : index
    %c0_27 = arith.constant 0 : index
    %51 = vector.load %arg10[%c32, %c0_27] : memref<128x256xf32, #tpu.memory_space<vmem>>, vector<16x256xf32>
    %cst_28 = arith.constant dense<0.000000e+00> : vector<16x256xf32>
    %52 = tpu.matmul %50, %11, %cst_28 {dimension_numbers = #tpu.dot_dimension_numbers<[1], [0], [0], [1], [0, 0, 1, 1], [], []>} : vector<16x128xbf16>, vector<128x256xbf16>, vector<16x256xf32> -> vector<16x256xf32>
    %53 = arith.addf %51, %52 : vector<16x256xf32>
    %54 = vector.extract_strided_slice %53 {offsets = [0, 0], sizes = [16, 128], strides = [1, 1]} : vector<16x256xf32> to vector<16x128xf32>
    %55 = vector.extract_strided_slice %53 {offsets = [0, 128], sizes = [16, 128], strides = [1, 1]} : vector<16x256xf32> to vector<16x128xf32>
    %cst_29 = arith.constant dense<0xFF800000> : vector<16xf32>
    %56 = vector.multi_reduction <maximumf>, %55, %cst_29 [1] : vector<16x128xf32> to vector<16xf32>
    %57 = vector.shape_cast %56 : vector<16xf32> to vector<16x1xf32>
    %58 = vector.broadcast %57 : vector<16x1xf32> to vector<16x128xf32>
    %59 = arith.subf %55, %58 : vector<16x128xf32>
    %60 = math.exp %59 : vector<16x128xf32>
    %cst_30 = arith.constant dense<0.000000e+00> : vector<16xf32>
    %61 = vector.multi_reduction <add>, %60, %cst_30 [1] : vector<16x128xf32> to vector<16xf32>
    %62 = vector.shape_cast %61 : vector<16xf32> to vector<16x1xf32>
    %63 = math.log %62 : vector<16x1xf32>
    %64 = vector.broadcast %63 : vector<16x1xf32> to vector<16x128xf32>
    %65 = arith.subf %59, %64 : vector<16x128xf32>
    %c2 = arith.constant 2 : index
    %c0_31 = arith.constant 0 : index
    %c0_32 = arith.constant 0 : index
    %66 = vector.load %arg7[%c2, %c0_31, %c0_32] : memref<8x16x128xf32, #tpu.memory_space<vmem>>, vector<1x16x128xf32>
    %67 = vector.shape_cast %66 : vector<1x16x128xf32> to vector<16x128xf32>
    %68 = vector.shape_cast %65 : vector<16x128xf32> to vector<1x16x128xf32>
    tpu.vector_store %arg7[%c2, %c0_31, %c0_32], %68 {strides = array<i32>} : memref<8x16x128xf32, #tpu.memory_space<vmem>>, vector<1x16x128xf32>,
    %69 = arith.truncf %54 : vector<16x128xf32> to vector<16x128xbf16>
    %c48 = arith.constant 48 : index
    %c0_33 = arith.constant 0 : index
    %70 = vector.load %arg10[%c48, %c0_33] : memref<128x256xf32, #tpu.memory_space<vmem>>, vector<16x256xf32>
    %cst_34 = arith.constant dense<0.000000e+00> : vector<16x256xf32>
    %71 = tpu.matmul %69, %11, %cst_34 {dimension_numbers = #tpu.dot_dimension_numbers<[1], [0], [0], [1], [0, 0, 1, 1], [], []>} : vector<16x128xbf16>, vector<128x256xbf16>, vector<16x256xf32> -> vector<16x256xf32>
    %72 = arith.addf %70, %71 : vector<16x256xf32>
    %73 = vector.extract_strided_slice %72 {offsets = [0, 0], sizes = [16, 128], strides = [1, 1]} : vector<16x256xf32> to vector<16x128xf32>
    %74 = vector.extract_strided_slice %72 {offsets = [0, 128], sizes = [16, 128], strides = [1, 1]} : vector<16x256xf32> to vector<16x128xf32>
    %cst_35 = arith.constant dense<0xFF800000> : vector<16xf32>
    %75 = vector.multi_reduction <maximumf>, %74, %cst_35 [1] : vector<16x128xf32> to vector<16xf32>
    %76 = vector.shape_cast %75 : vector<16xf32> to vector<16x1xf32>
    %77 = vector.broadcast %76 : vector<16x1xf32> to vector<16x128xf32>
    %78 = arith.subf %74, %77 : vector<16x128xf32>
    %79 = math.exp %78 : vector<16x128xf32>
    %cst_36 = arith.constant dense<0.000000e+00> : vector<16xf32>
    %80 = vector.multi_reduction <add>, %79, %cst_36 [1] : vector<16x128xf32> to vector<16xf32>
    %81 = vector.shape_cast %80 : vector<16xf32> to vector<16x1xf32>
    %82 = math.log %81 : vector<16x1xf32>
    %83 = vector.broadcast %82 : vector<16x1xf32> to vector<16x128xf32>
    %84 = arith.subf %78, %83 : vector<16x128xf32>
    %c3 = arith.constant 3 : index
    %c0_37 = arith.constant 0 : index
    %c0_38 = arith.constant 0 : index
    %85 = vector.load %arg7[%c3, %c0_37, %c0_38] : memref<8x16x128xf32, #tpu.memory_space<vmem>>, vector<1x16x128xf32>
    %86 = vector.shape_cast %85 : vector<1x16x128xf32> to vector<16x128xf32>
    %87 = vector.shape_cast %84 : vector<16x128xf32> to vector<1x16x128xf32>
    tpu.vector_store %arg7[%c3, %c0_37, %c0_38], %87 {strides = array<i32>} : memref<8x16x128xf32, #tpu.memory_space<vmem>>, vector<1x16x128xf32>,
    %88 = arith.truncf %73 : vector<16x128xf32> to vector<16x128xbf16>
    %c64 = arith.constant 64 : index
    %c0_39 = arith.constant 0 : index
    %89 = vector.load %arg10[%c64, %c0_39] : memref<128x256xf32, #tpu.memory_space<vmem>>, vector<16x256xf32>
    %cst_40 = arith.constant dense<0.000000e+00> : vector<16x256xf32>
    %90 = tpu.matmul %88, %11, %cst_40 {dimension_numbers = #tpu.dot_dimension_numbers<[1], [0], [0], [1], [0, 0, 1, 1], [], []>} : vector<16x128xbf16>, vector<128x256xbf16>, vector<16x256xf32> -> vector<16x256xf32>
    %91 = arith.addf %89, %90 : vector<16x256xf32>
    %92 = vector.extract_strided_slice %91 {offsets = [0, 0], sizes = [16, 128], strides = [1, 1]} : vector<16x256xf32> to vector<16x128xf32>
    %93 = vector.extract_strided_slice %91 {offsets = [0, 128], sizes = [16, 128], strides = [1, 1]} : vector<16x256xf32> to vector<16x128xf32>
    %cst_41 = arith.constant dense<0xFF800000> : vector<16xf32>
    %94 = vector.multi_reduction <maximumf>, %93, %cst_41 [1] : vector<16x128xf32> to vector<16xf32>
    %95 = vector.shape_cast %94 : vector<16xf32> to vector<16x1xf32>
    %96 = vector.broadcast %95 : vector<16x1xf32> to vector<16x128xf32>
    %97 = arith.subf %93, %96 : vector<16x128xf32>
    %98 = math.exp %97 : vector<16x128xf32>
    %cst_42 = arith.constant dense<0.000000e+00> : vector<16xf32>
    %99 = vector.multi_reduction <add>, %98, %cst_42 [1] : vector<16x128xf32> to vector<16xf32>
    %100 = vector.shape_cast %99 : vector<16xf32> to vector<16x1xf32>
    %101 = math.log %100 : vector<16x1xf32>
    %102 = vector.broadcast %101 : vector<16x1xf32> to vector<16x128xf32>
    %103 = arith.subf %97, %102 : vector<16x128xf32>
    %c4 = arith.constant 4 : index
    %c0_43 = arith.constant 0 : index
    %c0_44 = arith.constant 0 : index
    %104 = vector.load %arg7[%c4, %c0_43, %c0_44] : memref<8x16x128xf32, #tpu.memory_space<vmem>>, vector<1x16x128xf32>
    %105 = vector.shape_cast %104 : vector<1x16x128xf32> to vector<16x128xf32>
    %106 = vector.shape_cast %103 : vector<16x128xf32> to vector<1x16x128xf32>
    tpu.vector_store %arg7[%c4, %c0_43, %c0_44], %106 {strides = array<i32>} : memref<8x16x128xf32, #tpu.memory_space<vmem>>, vector<1x16x128xf32>,
    %107 = arith.truncf %92 : vector<16x128xf32> to vector<16x128xbf16>
    %c80 = arith.constant 80 : index
    %c0_45 = arith.constant 0 : index
    %108 = vector.load %arg10[%c80, %c0_45] : memref<128x256xf32, #tpu.memory_space<vmem>>, vector<16x256xf32>
    %cst_46 = arith.constant dense<0.000000e+00> : vector<16x256xf32>
    %109 = tpu.matmul %107, %11, %cst_46 {dimension_numbers = #tpu.dot_dimension_numbers<[1], [0], [0], [1], [0, 0, 1, 1], [], []>} : vector<16x128xbf16>, vector<128x256xbf16>, vector<16x256xf32> -> vector<16x256xf32>
    %110 = arith.addf %108, %109 : vector<16x256xf32>
    %111 = vector.extract_strided_slice %110 {offsets = [0, 0], sizes = [16, 128], strides = [1, 1]} : vector<16x256xf32> to vector<16x128xf32>
    %112 = vector.extract_strided_slice %110 {offsets = [0, 128], sizes = [16, 128], strides = [1, 1]} : vector<16x256xf32> to vector<16x128xf32>
    %cst_47 = arith.constant dense<0xFF800000> : vector<16xf32>
    %113 = vector.multi_reduction <maximumf>, %112, %cst_47 [1] : vector<16x128xf32> to vector<16xf32>
    %114 = vector.shape_cast %113 : vector<16xf32> to vector<16x1xf32>
    %115 = vector.broadcast %114 : vector<16x1xf32> to vector<16x128xf32>
    %116 = arith.subf %112, %115 : vector<16x128xf32>
    %117 = math.exp %116 : vector<16x128xf32>
    %cst_48 = arith.constant dense<0.000000e+00> : vector<16xf32>
    %118 = vector.multi_reduction <add>, %117, %cst_48 [1] : vector<16x128xf32> to vector<16xf32>
    %119 = vector.shape_cast %118 : vector<16xf32> to vector<16x1xf32>
    %120 = math.log %119 : vector<16x1xf32>
    %121 = vector.broadcast %120 : vector<16x1xf32> to vector<16x128xf32>
    %122 = arith.subf %116, %121 : vector<16x128xf32>
    %c5 = arith.constant 5 : index
    %c0_49 = arith.constant 0 : index
    %c0_50 = arith.constant 0 : index
    %123 = vector.load %arg7[%c5, %c0_49, %c0_50] : memref<8x16x128xf32, #tpu.memory_space<vmem>>, vector<1x16x128xf32>
    %124 = vector.shape_cast %123 : vector<1x16x128xf32> to vector<16x128xf32>
    %125 = vector.shape_cast %122 : vector<16x128xf32> to vector<1x16x128xf32>
    tpu.vector_store %arg7[%c5, %c0_49, %c0_50], %125 {strides = array<i32>} : memref<8x16x128xf32, #tpu.memory_space<vmem>>, vector<1x16x128xf32>,
    %126 = arith.truncf %111 : vector<16x128xf32> to vector<16x128xbf16>
    %c96 = arith.constant 96 : index
    %c0_51 = arith.constant 0 : index
    %127 = vector.load %arg10[%c96, %c0_51] : memref<128x256xf32, #tpu.memory_space<vmem>>, vector<16x256xf32>
    %cst_52 = arith.constant dense<0.000000e+00> : vector<16x256xf32>
    %128 = tpu.matmul %126, %11, %cst_52 {dimension_numbers = #tpu.dot_dimension_numbers<[1], [0], [0], [1], [0, 0, 1, 1], [], []>} : vector<16x128xbf16>, vector<128x256xbf16>, vector<16x256xf32> -> vector<16x256xf32>
    %129 = arith.addf %127, %128 : vector<16x256xf32>
    %130 = vector.extract_strided_slice %129 {offsets = [0, 0], sizes = [16, 128], strides = [1, 1]} : vector<16x256xf32> to vector<16x128xf32>
    %131 = vector.extract_strided_slice %129 {offsets = [0, 128], sizes = [16, 128], strides = [1, 1]} : vector<16x256xf32> to vector<16x128xf32>
    %cst_53 = arith.constant dense<0xFF800000> : vector<16xf32>
    %132 = vector.multi_reduction <maximumf>, %131, %cst_53 [1] : vector<16x128xf32> to vector<16xf32>
    %133 = vector.shape_cast %132 : vector<16xf32> to vector<16x1xf32>
    %134 = vector.broadcast %133 : vector<16x1xf32> to vector<16x128xf32>
    %135 = arith.subf %131, %134 : vector<16x128xf32>
    %136 = math.exp %135 : vector<16x128xf32>
    %cst_54 = arith.constant dense<0.000000e+00> : vector<16xf32>
    %137 = vector.multi_reduction <add>, %136, %cst_54 [1] : vector<16x128xf32> to vector<16xf32>
    %138 = vector.shape_cast %137 : vector<16xf32> to vector<16x1xf32>
    %139 = math.log %138 : vector<16x1xf32>
    %140 = vector.broadcast %139 : vector<16x1xf32> to vector<16x128xf32>
    %141 = arith.subf %135, %140 : vector<16x128xf32>
    %c6 = arith.constant 6 : index
    %c0_55 = arith.constant 0 : index
    %c0_56 = arith.constant 0 : index
    %142 = vector.load %arg7[%c6, %c0_55, %c0_56] : memref<8x16x128xf32, #tpu.memory_space<vmem>>, vector<1x16x128xf32>
    %143 = vector.shape_cast %142 : vector<1x16x128xf32> to vector<16x128xf32>
    %144 = vector.shape_cast %141 : vector<16x128xf32> to vector<1x16x128xf32>
    tpu.vector_store %arg7[%c6, %c0_55, %c0_56], %144 {strides = array<i32>} : memref<8x16x128xf32, #tpu.memory_space<vmem>>, vector<1x16x128xf32>,
    %145 = arith.truncf %130 : vector<16x128xf32> to vector<16x128xbf16>
    %c112 = arith.constant 112 : index
    %c0_57 = arith.constant 0 : index
    %146 = vector.load %arg10[%c112, %c0_57] : memref<128x256xf32, #tpu.memory_space<vmem>>, vector<16x256xf32>
    %cst_58 = arith.constant dense<0.000000e+00> : vector<16x256xf32>
    %147 = tpu.matmul %145, %11, %cst_58 {dimension_numbers = #tpu.dot_dimension_numbers<[1], [0], [0], [1], [0, 0, 1, 1], [], []>} : vector<16x128xbf16>, vector<128x256xbf16>, vector<16x256xf32> -> vector<16x256xf32>
    %148 = arith.addf %146, %147 : vector<16x256xf32>
    %149 = vector.extract_strided_slice %148 {offsets = [0, 0], sizes = [16, 128], strides = [1, 1]} : vector<16x256xf32> to vector<16x128xf32>
    %150 = vector.extract_strided_slice %148 {offsets = [0, 128], sizes = [16, 128], strides = [1, 1]} : vector<16x256xf32> to vector<16x128xf32>
    %cst_59 = arith.constant dense<0xFF800000> : vector<16xf32>
    %151 = vector.multi_reduction <maximumf>, %150, %cst_59 [1] : vector<16x128xf32> to vector<16xf32>
    %152 = vector.shape_cast %151 : vector<16xf32> to vector<16x1xf32>
    %153 = vector.broadcast %152 : vector<16x1xf32> to vector<16x128xf32>
    %154 = arith.subf %150, %153 : vector<16x128xf32>
    %155 = math.exp %154 : vector<16x128xf32>
    %cst_60 = arith.constant dense<0.000000e+00> : vector<16xf32>
    %156 = vector.multi_reduction <add>, %155, %cst_60 [1] : vector<16x128xf32> to vector<16xf32>
    %157 = vector.shape_cast %156 : vector<16xf32> to vector<16x1xf32>
    %158 = math.log %157 : vector<16x1xf32>
    %159 = vector.broadcast %158 : vector<16x1xf32> to vector<16x128xf32>
    %160 = arith.subf %154, %159 : vector<16x128xf32>
    %c7 = arith.constant 7 : index
    %c0_61 = arith.constant 0 : index
    %c0_62 = arith.constant 0 : index
    %161 = vector.load %arg7[%c7, %c0_61, %c0_62] : memref<8x16x128xf32, #tpu.memory_space<vmem>>, vector<1x16x128xf32>
    %162 = vector.shape_cast %161 : vector<1x16x128xf32> to vector<16x128xf32>
    %163 = vector.shape_cast %160 : vector<16x128xf32> to vector<1x16x128xf32>
    tpu.vector_store %arg7[%c7, %c0_61, %c0_62], %163 {strides = array<i32>} : memref<8x16x128xf32, #tpu.memory_space<vmem>>, vector<1x16x128xf32>,
    %164 = arith.truncf %149 : vector<16x128xf32> to vector<16x128xbf16>
    %c0_63 = arith.constant 0 : index
    %c0_64 = arith.constant 0 : index
    %165 = vector.load %arg9[%c0_63, %c0_64] : memref<16x128xbf16, #tpu.memory_space<vmem>>, vector<16x128xbf16>
    tpu.vector_store %arg9[%c0_63, %c0_64], %164 {strides = array<i32>} : memref<16x128xbf16, #tpu.memory_space<vmem>>, vector<16x128xbf16>,
    %c0_65 = arith.constant 0 : index
    %c0_66 = arith.constant 0 : index
    %166 = vector.load %arg8[%c0_65, %c0_66] : memref<16x128xf32, #tpu.memory_space<vmem>>, vector<16x128xf32>
    tpu.vector_store %arg8[%c0_65, %c0_66], %149 {strides = array<i32>} : memref<16x128xf32, #tpu.memory_space<vmem>>, vector<16x128xf32>,
    return
  }
  func.func @transform_0(%arg0: i32, %arg1: i32) -> (i32, i32, i32) {
    %c0_i32 = arith.constant 0 : i32
    %c0_i32_0 = arith.constant 0 : i32
    return %arg1, %arg0, %c0_i32 : i32, i32, i32
  }
  func.func @transform_1(%arg0: i32, %arg1: i32) -> (i32, i32) {
    %c0_i32 = arith.constant 0 : i32
    %c0_i32_0 = arith.constant 0 : i32
    return %arg0, %c0_i32 : i32, i32
  }
  func.func @transform_2(%arg0: i32, %arg1: i32) -> (i32, i32) {
    %c0_i32 = arith.constant 0 : i32
    %c0_i32_0 = arith.constant 0 : i32
    %c0_i32_1 = arith.constant 0 : i32
    return %c0_i32, %c0_i32_0 : i32, i32
  }
  func.func @transform_3(%arg0: i32, %arg1: i32) -> (i32, i32) {
    %c0_i32 = arith.constant 0 : i32
    %c0_i32_0 = arith.constant 0 : i32
    %c0_i32_1 = arith.constant 0 : i32
    return %c0_i32, %c0_i32_0 : i32, i32
  }
  func.func @transform_4(%arg0: i32, %arg1: i32) -> (i32, i32) {
    %c0_i32 = arith.constant 0 : i32
    %c0_i32_0 = arith.constant 0 : i32
    %c0_i32_1 = arith.constant 0 : i32
    return %c0_i32, %c0_i32_0 : i32, i32
  }
  func.func @transform_5(%arg0: i32, %arg1: i32) -> (i32, i32, i32) {
    %c0_i32 = arith.constant 0 : i32
    %c0_i32_0 = arith.constant 0 : i32
    return %arg1, %arg0, %c0_i32 : i32, i32, i32
  }
  func.func @transform_6(%arg0: i32, %arg1: i32) -> (i32, i32) {
    %c0_i32 = arith.constant 0 : i32
    %c0_i32_0 = arith.constant 0 : i32
    return %arg0, %c0_i32 : i32, i32
  }
}

</mosaic_0001>

<bundles_post_ra>
// kernel: tpu_custom_call.1
= control target key start
LH: loop header
LB: loop body
LE: loop exit
PB: predicated region body
PF: predicated region fallthrough
CT: control target
= control target key end

     0   :  { %s2950_s0 = inlined_call_operand.hbm [shape: bf16[16,16,128], index: 0, kind: input, shape index: {}]   ;;  %s2951_s1 = inlined_call_operand.hbm [shape: f32[16,128], index: 1, kind: input, shape index: {}]   ;;  %s2952_s2 = inlined_call_operand.hbm [shape: bf16[128,256], index: 2, kind: input, shape index: {}]   ;;  %s2953_s3 = inlined_call_operand.hbm [shape: bf16[128,256], index: 3, kind: input, shape index: {}]   ;;  %s2954_s4 = inlined_call_operand.vmem [shape: f32[1,256], index: 4, kind: input, shape index: {}]   ;;  %s2955_s5 = inlined_call_operand.hbm [shape: f32[16,16,128], index: 5, kind: output, shape index: {0}]   ;;  %s2956_s6 = inlined_call_operand.hbm [shape: f32[16,128], index: 6, kind: output, shape index: {1}]  }
   0x1   :  { %2965 = sst [smem:[#allocation22_spill]] %s2955_s5 }
   0x2   :  { %12 = vsyncpa [#allocation5], 0 }
   0x3   :  { %14 = vsyncpa [#allocation5 + $0x1], 0 }
   0x4   :  { %15 = vsyncpa [#allocation8], 0 }
   0x5   :  { %16 = vsyncpa [#allocation11], 0 }
   0x6   :  { %17 = vsyncpa [#allocation6], 0 }
   0x7   :  { %19 = vsyncpa [#allocation6 + $0x1], 0 }
   0x8   :  { %20 = vsyncpa [#allocation14], 0  ;;  %s2199_s21 = smov 0   ;;  %s2201_s22 = smov 0  }
   0x9   :  { %s2203_s23 = smov 0   ;;  %s2205_s24 = smov 0  }
   0xa   :  { %s2207_s25 = smov 0   ;;  %s2209_s26 = smov 0  }
   0xb LB: > { %2966 = sst [smem:[#allocation20_spill]] %s2129_s21  ;;  %s1540_s27 = sadd.s32 4294967295, %s2149_s26   ;;  %s2149_s26 = sphi %s2209_s26, %s26_s26   ;;  %s2145_s25 = sphi %s2207_s25, %s2991_s25   ;;  %s2141_s24 = sphi %s2205_s24, %s2990_s24   ;;  %s2137_s23 = sphi %s2203_s23, %s2989_s23   ;;  %s2133_s22 = sphi %s2201_s22, %s2988_s22   ;;  %s2129_s21 = sphi %s2199_s21, %s2987_s21  }
   0xc   : > { %s1541_s28 = sadd.s32 4294967294, %s2149_s26   ;;  %p60_p0 = scmp.ne.s32.totalorder %s2133_s22, %s2129_s21 }
   0xd   : > { %p2233_p1 = scmp.eq.s32.totalorder %s1540_s27, 0  ;;  %p2237_p2 = scmp.eq.s32.totalorder %s1540_s27, 1 }
   0xe   : > { %p181_p3 = scmp.eq.s32.totalorder %s1541_s28, 1  ;;  %p1542_p5 = scmp.ge.s32.totalorder %s2149_s26, 1 }
   0xf   : > { %s2967_s29 = scalar_select %p2233_p1, 1, 0 }
  0x10   : > { %s2968_s30 = scalar_select %p2237_p2, 1, 0 }
  0x11   : > { %p2243_p4 = por %p2233_p1, %p60_p0  ;;  %p2248_p6 = por %p181_p3, %p60_p0 }
  0x12   : > { %p214_p7 = scmp.lt.s32.totalorder %s2149_s26, 3  ;;  %s2151_s10 = smov [#allocation7]  }
  0x13   : > { %s2969_s7 = scalar_select %p2243_p4, 1, 0 }
  0x14   : > { %s2970_s8 = scalar_select %p2248_p6, 1, 0 }
  0x15   : > { %p2253_p8 = pnand %p1542_p5, %p214_p7  ;;  %s229_s11 = sshll.u32 %s2151_s10, 4  ;;  %s2257_s11 = int_to_ptr.vmem [resolvable:$true] %s229_s11 }
  0x16   : > { %2971 = sst [smem:[#allocation21_spill]] %s2970_s8  ;;  %s2152_s13 = smov [#allocation9]  }
  0x17   : > { %s2972_s9 = scalar_select %p2253_p8, 1, 0 }
  0x18   : > { %p1708_p9 = pneg %p2253_p8  ;;  %s242_s14 = sshll.u32 %s2152_s13, 4  ;;  %s2268_s14 = int_to_ptr.vmem [resolvable:$true] %s242_s14 }
  0x19   : > { %s2153_s15 = smov [#allocation10]   ;;  %s1915_s19 = scalar_lea.hbm %s2951_s1, 256 }
  0x1a   : > { %p2264_p11 = pnand %p1708_p9, %p2233_p1  ;;  %s2270_s16 = sshll.u32 %s2153_s15, 4  ;;  %s256_s16 = int_to_ptr.vmem [resolvable:$true] %s2270_s16 }
  0x1b   : > { %p1916_p12 = scmp.ne.s32.totalorder %s2951_s1, %s1915_s19  ;;  %p1922_p5 = scmp.lt.u32.totalorder %s1915_s19, %s2951_s1 }
  0x1c   : > { %p2280_p13 = pneg %p2264_p11 }
  0x1e   : > { %p1918_p0 = pnand %p2280_p13, %p1916_p12 }
  0x20   : > { %p1919_p3 = pneg %p1918_p0 }
  0x22   : > { %p1924_p7 = pnand %p1922_p5, %p1919_p3 }
  0x24   : > { %1927 = shalt.err (!%p1924_p7)
}
  0x25   : > { %s1928_s15 = scalar_lea.vmem %s2257_s11, 256  ;;  %p1936_p1 = scmp.lt.s32.totalorder %s2257_s11, %s2257_s11 }
  0x26   : > { %p1929_p9 = scmp.ne.s32.totalorder %s2257_s11, %s1928_s15  ;;  %p1937_p4 = scmp.lt.s32.totalorder %s1928_s15, %s1928_s15 }
  0x28   : > { %p1931_p10 = pnand %p1929_p9, %p2280_p13  ;;  %p1938_p12 = por %p1937_p4, %p1936_p1 }
  0x2a   : > { %p1932_p6 = pneg %p1931_p10 }
  0x2c   : > { %p1939_p0 = pnand %p1938_p12, %p1932_p6 }
  0x2e   : > { %1942 = shalt.err (!%p1939_p0)
}
  0x2f   : > { %s2154_s17 = smov 128   ;;  %s2155_s18 = smov 8  }
  0x30   : > { %1711 = dma.hbm_to_vmem [thread:$0]  (!%p2264_p11), %s2951_s1, 256, %s2257_s11, [#allocation8], %s2154_s17, %s2154_s17, %s2155_s18  }
  0x31   : > { %s1943_s13 = scalar_lea.hbm %s2952_s2, 2048 }
  0x32   : > { %p1944_p1 = scmp.ne.s32.totalorder %s2952_s2, %s1943_s13  ;;  %p1950_p10 = scmp.lt.u32.totalorder %s1943_s13, %s2952_s2 }
  0x34   : > { %p1946_p4 = pnand %p1944_p1, %p2280_p13 }
  0x36   : > { %p1947_p6 = pneg %p1946_p4 }
  0x38   : > { %p1952_p3 = pnand %p1950_p10, %p1947_p6 }
  0x3a   : > { %1955 = shalt.err (!%p1952_p3)
}
  0x3b   : > { %s1956_s11 = scalar_lea.vmem %s2268_s14, 2048  ;;  %p1964_p12 = scmp.lt.s32.totalorder %s2268_s14, %s2268_s14 }
  0x3c   : > { %p1957_p5 = scmp.ne.s32.totalorder %s2268_s14, %s1956_s11  ;;  %p1965_p0 = scmp.lt.s32.totalorder %s1956_s11, %s1956_s11 }
  0x3e   : > { %p1959_p7 = pnand %p1957_p5, %p2280_p13  ;;  %p1966_p1 = por %p1965_p0, %p1964_p12 }
  0x40   : > { %p1960_p9 = pneg %p1959_p7 }
  0x42   : > { %p1967_p4 = pnand %p1966_p1, %p1960_p9 }
  0x44   : > { %1970 = shalt.err (!%p1967_p4)
}
  0x45   : > { %1714 = dma.hbm_to_vmem [thread:$0]  (!%p2264_p11), %s2952_s2, 2048, %s2268_s14, [#allocation8], %s2154_s17, %s2154_s17, %s2155_s18  }
  0x46   : > { %s1971_s20 = scalar_lea.hbm %s2953_s3, 2048 }
  0x47   : > { %p1972_p6 = scmp.ne.s32.totalorder %s2953_s3, %s1971_s20  ;;  %p1978_p5 = scmp.lt.u32.totalorder %s1971_s20, %s2953_s3 }
  0x49   : > { %p1974_p10 = pnand %p1972_p6, %p2280_p13 }
  0x4b   : > { %p1975_p3 = pneg %p1974_p10 }
  0x4d   : > { %p1980_p7 = pnand %p1978_p5, %p1975_p3 }
  0x4f   : > { %1983 = shalt.err (!%p1980_p7)
}
  0x50   : > { %s1984_s11 = scalar_lea.vmem %s256_s16, 2048  ;;  %p1992_p1 = scmp.lt.s32.totalorder %s256_s16, %s256_s16 }
  0x51   : > { %p1985_p9 = scmp.ne.s32.totalorder %s256_s16, %s1984_s11  ;;  %p1993_p4 = scmp.lt.s32.totalorder %s1984_s11, %s1984_s11 }
  0x53   : > { %p1987_p12 = pnand %p1985_p9, %p2280_p13  ;;  %p1994_p8 = por %p1993_p4, %p1992_p1 }
  0x55   : > { %p1988_p0 = pneg %p1987_p12 }
  0x57   : > { %p1995_p2 = pnand %p1994_p8, %p1988_p0 }
  0x59   : > { %1998 = shalt.err (!%p1995_p2)
}
  0x5a   : > { %1717 = dma.hbm_to_vmem [thread:$0]  (!%p2264_p11), %s2953_s3, 2048, %s256_s16, [#allocation11], %s2154_s17, %s2154_s17, %s2155_s18  }
  0x5b   : > { %s47_s28 = sadd.s32 1, %s2137_s23  ;;  %s35_s12 = sadd.s32 1, %s2145_s25 }
  0x5c   : > { %p54_p2 = scmp.ne.s32.totalorder %s2137_s23, %s2133_s22  ;;  %p36_p8 = scmp.ge.s32.totalorder %s35_s12, 2 }
  0x5d   : > { %p55_p13 = scmp.eq.s32.totalorder %s2149_s26, 0  ;;  %p2975_p6 = scmp.ne.s32.totalorder %s2968_s30, 0 }
  0x5e   : > { %p1729_p3 = scmp.lt.s32.totalorder %s2149_s26, 2  ;;  %s2993_s12 = smov (%p36_p8, %s35_s12), 0 }
  0x5f   : > { %p2359_p10 = por %p2975_p6, %p54_p2  ;;  %p56_p5 = por %p55_p13, %p54_p2 }
  0x60   : > { %s272_s8 = sand.u32 1, %s2137_s23   ;;  %s42_s19 = ssub.s32 %s2145_s25, %s2993_s12 }
  0x61   : > { %p45_p7 = scmp.eq.s32.totalorder %s42_s19, 0  ;;  %s1547_s16 = sshll.u32 %s272_s8, 6 }
  0x62   : > { %s1621_s17 = sshll.u32 %s2145_s25, 10  ;;  %s276_s13 = scalar_lea.vmem [#allocation4], %s1547_s16 }
  0x63   : > { %s2371_s18 = scalar_select %p45_p7, %s2137_s23, %s47_s28  }
  0x64   : > { %s2376_s10 = scalar_lea.hbm %s2950_s0, %s1621_s17  ;;  %s286_s15 = sshll.u32 %s276_s13, 4  ;;  %s2378_s15 = int_to_ptr.vmem [resolvable:$true] %s286_s15 }
  0x65   : > { %p2382_p11 = pnand %p1729_p3, %p56_p5  ;;  %s2386_s14 = scalar_lea.sflag [#allocation5], %s272_s8 }
  0x66   : > { %s1999_s5 = scalar_lea.hbm %s2376_s10, 1024  ;;  %s2004_s16 = scalar_lea.hbm %s2950_s0, 2048 }
  0x67   : > { %p2000_p9 = scmp.ne.s32.totalorder %s2376_s10, %s1999_s5  ;;  %p2001_p12 = pneg %p2382_p11 }
  0x68   : > { %p2005_p4 = scmp.lt.u32.totalorder %s2376_s10, %s2950_s0  ;;  %p2006_p2 = scmp.lt.u32.totalorder %s2004_s16, %s1999_s5 }
  0x69   : > { %p2002_p0 = pnand %p2001_p12, %p2000_p9  ;;  %p2008_p13 = scmp.lt.u32.totalorder %s1999_s5, %s2376_s10 }
  0x6a   : > { %p2007_p8 = por %p2006_p2, %p2005_p4 }
  0x6b   : > { %p2003_p1 = pneg %p2002_p0 }
  0x6c   : > { %p2009_p6 = por %p2008_p13, %p2007_p8 }
  0x6e   : > { %p2010_p3 = pnand %p2009_p6, %p2003_p1 }
  0x70   : > { %2013 = shalt.err (!%p2010_p3)
}
  0x71   : > { %s2014_s8 = scalar_lea.vmem %s2378_s15, 1024  ;;  %s2156_s27 = smov [#allocation4]  }
  0x72   : > { %p2015_p5 = scmp.ne.s32.totalorder %s2378_s15, %s2014_s8  ;;  %s2019_s13 = sshll.u32 %s2156_s27, 4  ;;  %s2020_s13 = int_to_ptr.vmem [resolvable:$false] %s2019_s13 }
  0x73   : > { %s2021_s28 = scalar_lea.vmem %s2020_s13, 2048  ;;  %p2022_p0 = scmp.lt.s32.totalorder %s2378_s15, %s2020_s13 }
  0x74   : > { %p2017_p7 = pnand %p2015_p5, %p2001_p12  ;;  %p2023_p4 = scmp.lt.s32.totalorder %s2021_s28, %s2014_s8 }
  0x76   : > { %p2018_p9 = pneg %p2017_p7  ;;  %p2024_p2 = por %p2023_p4, %p2022_p0 }
  0x78   : > { %p2025_p8 = pnand %p2024_p2, %p2018_p9 }
  0x7a   : > { %2028 = shalt.err (!%p2025_p8)
}
  0x7b   : > { %s2157_s5 = smov 64   ;;  %s2158_s19 = smov 4  }
  0x7c   : > { %1721 = dma.hbm_to_vmem [thread:$0]  (!%p2382_p11), %s2376_s10, 1024, %s2378_s15, %s2386_s14, %s2157_s5, %s2157_s5, %s2158_s19  }
  0x7d   : > { %p2978_p12 = scmp.ne.s32.totalorder %s2972_s9, 0 }
  0x7e   : > { %s2417_s16 = sand.u32 (!%p2978_p12), 1, %s2133_s22   ;;  %p2979_p1 = scmp.ne.s32.totalorder (!%p2978_p12), %s2969_s7, 0 }
  0x7f   : > { %298 = sbr.rel (%p2978_p12) target bundleno = 2320 (0x910), region = 40  ;;  %s1552_s17 = sshll.u32 (!%p2978_p12), %s2417_s16, 6 }
  0x80   : > { %s301_s20 = scalar_lea.sflag (!%p2978_p12), [#allocation5], %s2417_s16  ;;  %s2421_s8 = scalar_lea.vmem (!%p2978_p12), [#allocation4], %s1552_s17 }
  0x86   : > { %2108 = dma.done.wait (%p2979_p1), %s301_s20, 1024  }
  0x87   : > { %2110 = vsyncadd (%p2979_p1), %s301_s20, 4294966272  ;;  %p2980_p11 = scmp.ne.s32.totalorder %s2967_s29, 0 }
  0x89   : > { %2112 = dma.done.wait (%p2980_p11), [#allocation8], 2304  }
  0x8a   : > { %2114 = vsyncadd (%p2980_p11), [#allocation8], 4294964992 }
  0x8b   : > { %2116 = dma.done.wait (%p2980_p11), [#allocation11], 2048  }
  0x8c   : > { %2118 = vsyncadd (%p2980_p11), [#allocation11], 4294965248  ;;  %s1556_s9 = sshll.u32 %s2417_s16, 7  ;;  %p1557_p13 = scmp.ne.s32.totalorder %s2141_s24, 0 }
  0x8d   : > { %s2436_s10 = scalar_lea.vmem [#allocation12], %s1556_s9  ;;  %v356_v0 = vld [vmem:[#allocation7] sm:$0xff] (!%p1557_p13)  ;;  %v357_v1 = vld [vmem:[#allocation7 + $0x8] sm:$0xff] (!%p1557_p13) }
  0x8e   : > { %355 = sbr.rel (%p1557_p13) target bundleno = 149 (0x95), region = 60  ;;  %v358_v2 = vpack.c.bf16 (!%p1557_p13), %v357_v1, %v356_v0 }
  0x90   : > { %359 = vst [vmem:[#allocation2] sm:$0xff] (!%p1557_p13), %v358_v2 }
  0x95 PF: > { %v1795_v3 = vld [vmem:[#allocation9 + $0x4] ss:$8 sps:$4 sm:$0xff]   ;;  %v1797_v4 = vld [vmem:[#allocation9] ss:$8 sps:$4 sm:$0xff]   ;;  %v2159_v5 = vmov 0   ;;  %v1819_v30 = vld [vmem:[%s2421_s8] sm:$0xff]   ;;  %v394_v61 = vlaneseq }
  0x96   : > { %564 = vmatprep.mubr.bf16.mxu1 %v2159_v5  ;;  %1034 = vmatprep.mubr.bf16.mxu0 %v2159_v5  ;;  %v1798_v6 = vld [vmem:[#allocation9 + $0x14] ss:$8 sps:$4 sm:$0xff]   ;;  %v1800_v7 = vld [vmem:[#allocation9 + $0x10] ss:$8 sps:$4 sm:$0xff]   ;;  %v1801_v8 = vld [vmem:[#allocation9 + $0x24] ss:$8 sps:$4 sm:$0xff]  }
  0x97   : > { %532 = vmatprep.subr.bf16.mxu1 %v1795_v3  ;;  %v1803_v9 = vld [vmem:[#allocation9 + $0x20] ss:$8 sps:$4 sm:$0xff]   ;;  %v1804_v10 = vld [vmem:[#allocation9 + $0x34] ss:$8 sps:$4 sm:$0xff]   ;;  %v1806_v11 = vld [vmem:[#allocation9 + $0x30] ss:$8 sps:$4 sm:$0xff]  }
  0x98   : > { %533 = vmatpush1.bf16.msra.mxu1 %v1797_v4  ;;  %v1807_v12 = vld [vmem:[#allocation9 + $0x44] ss:$8 sps:$4 sm:$0xff]   ;;  %v2443_v14 = vld [vmem:[#allocation10] ss:$8 sps:$4 sm:$0xff]   ;;  %v2445_v15 = vld [vmem:[#allocation10 + $0x14] ss:$8 sps:$4 sm:$0xff]  }
  0x99   : > { %534 = vmatprep.subr.bf16.mxu1 %v1798_v6  ;;  %v2441_v13 = vld [vmem:[#allocation10 + $0x4] ss:$8 sps:$4 sm:$0xff]   ;;  %v1809_v16 = vld [vmem:[#allocation9 + $0x40] ss:$8 sps:$4 sm:$0xff]   ;;  %v1810_v17 = vld [vmem:[#allocation9 + $0x54] ss:$8 sps:$4 sm:$0xff]  }
  0x9a   : > { %1002 = vmatprep.subr.bf16.mxu0 %v2441_v13  ;;  %v2450_v18 = vld [vmem:[#allocation10 + $0x10] ss:$8 sps:$4 sm:$0xff]   ;;  %v2452_v19 = vld [vmem:[#allocation10 + $0x24] ss:$8 sps:$4 sm:$0xff]   ;;  %v2456_v22 = vld [vmem:[#allocation10 + $0x20] ss:$8 sps:$4 sm:$0xff]  }
  0x9b   : > { %1003 = vmatpush1.bf16.msra.mxu0 %v2443_v14  ;;  %v1812_v20 = vld [vmem:[#allocation9 + $0x50] ss:$8 sps:$4 sm:$0xff]   ;;  %v1813_v21 = vld [vmem:[#allocation9 + $0x64] ss:$8 sps:$4 sm:$0xff]   ;;  %v2458_v23 = vld [vmem:[#allocation10 + $0x34] ss:$8 sps:$4 sm:$0xff]  }
  0x9c   : > { %535 = vmatpush1.bf16.msra.mxu1 %v1800_v7  ;;  %1004 = vmatprep.subr.bf16.mxu0 %v2445_v15  ;;  %v1815_v24 = vld [vmem:[#allocation9 + $0x60] ss:$8 sps:$4 sm:$0xff]   ;;  %v1816_v25 = vld [vmem:[#allocation9 + $0x74] ss:$8 sps:$4 sm:$0xff]   ;;  %v2462_v26 = vld [vmem:[#allocation10 + $0x30] ss:$8 sps:$4 sm:$0xff]  }
  0x9d   : > { %536 = vmatprep.subr.bf16.mxu1 %v1801_v8  ;;  %v2464_v27 = vld [vmem:[#allocation10 + $0x44] ss:$8 sps:$4 sm:$0xff]   ;;  %v1818_v28 = vld [vmem:[#allocation9 + $0x70] ss:$8 sps:$4 sm:$0xff]   ;;  %v2468_v29 = vld [vmem:[#allocation10 + $0x40] ss:$8 sps:$4 sm:$0xff]  }
  0x9e   : > { %v2471_v31 = vld [vmem:[#allocation10 + $0x54] ss:$8 sps:$4 sm:$0xff]   ;;  %v2476_v32 = vld [vmem:[#allocation10 + $0x50] ss:$8 sps:$4 sm:$0xff]   ;;  %v2480_v33 = vld [vmem:[#allocation10 + $0x64] ss:$8 sps:$4 sm:$0xff]  }
  0x9f   : > { %1005 = vmatpush1.bf16.msra.mxu0 %v2450_v18  ;;  %v1823_v34 = vld [vmem:[%s2421_s8 + $0x8] sm:$0xff]   ;;  %v2486_v35 = vld [vmem:[#allocation10 + $0x60] ss:$8 sps:$4 sm:$0xff]   ;;  %v1835_v40 = vld [vmem:[%s2421_s8 + $0x20] sm:$0xff]   ;;  %v395_v62 = vshrl.u32 %v394_v61, 7  ;;  %s2160_s15 = smov [#allocation13]  }
  0xa0   : > { %537 = vmatpush1.bf16.msra.mxu1 %v1803_v9  ;;  %1006 = vmatprep.subr.bf16.mxu0 %v2452_v19  ;;  %v2489_v36 = vld [vmem:[#allocation10 + $0x74] ss:$8 sps:$4 sm:$0xff]   ;;  %v2494_v37 = vld [vmem:[#allocation10 + $0x70] ss:$8 sps:$4 sm:$0xff]   ;;  %v1827_v38 = vld [vmem:[%s2421_s8 + $0x10] sm:$0xff]   ;;  %s1409_s11 = sshll.u32 %s2160_s15, 4  ;;  %s1410_s11 = int_to_ptr.vmem [resolvable:$true] %s1409_s11 }
  0xa1   : > { %538 = vmatprep.subr.bf16.mxu1 %v1804_v10  ;;  %v1831_v39 = vld [vmem:[%s2421_s8 + $0x18] sm:$0xff]   ;;  %v1839_v41 = vld [vmem:[%s2421_s8 + $0x28] sm:$0xff]   ;;  %v1843_v42 = vld [vmem:[%s2421_s8 + $0x30] sm:$0xff]   ;;  %v400_v3 = vsub.s32 1, %v395_v62  ;;  %v396_v6 = vsub.s32 0, %v395_v62  ;;  %s2029_s14 = scalar_lea.vmem %s1410_s11, 256  ;;  %p2036_p9 = scmp.lt.s32.totalorder %s1410_s11, %s1410_s11 }
  0xa2   : > { %v1847_v43 = vld [vmem:[%s2421_s8 + $0x38] sm:$0xff]   ;;  %p2030_p6 = scmp.ne.s32.totalorder %s1410_s11, %s2029_s14  ;;  %p2981_p3 = scmp.ne.s32.totalorder %s2968_s30, 0 }
  0xa3   : > { %1007 = vmatpush1.bf16.msra.mxu0 %v2456_v22  ;;  %v693_v44 = vld [vmem:[#allocation2] sm:$0xff]  ;;  %p2037_p0 = scmp.lt.s32.totalorder %s2029_s14, %s2029_s14 }
  0xa4   : > { %539 = vmatpush1.bf16.msra.mxu1 %v1806_v11  ;;  %1008 = vmatprep.subr.bf16.mxu0 %v2458_v23  ;;  %v392_v4 = vld [vmem:[%s2954_s4] sm:$0x3]  ;;  %p2031_p5 = pnand %p2030_p6, %p2981_p3 }
  0xa5   : > { %540 = vmatprep.subr.bf16.mxu1 %v1807_v12  ;;  %v2583_v7 = vrot.slane %v392_v4, %v400_v3  ;;  %v2585_v9 = vrot.slane %v392_v4, %v396_v6  ;;  %p2038_p4 = por %p2037_p0, %p2036_p9 }
  0xa6   : > { %p2032_p7 = pneg %p2031_p5 }
  0xa7   : > { %1009 = vmatpush1.bf16.msra.mxu0 %v2462_v26 }
  0xa8   : > { %541 = vmatpush1.bf16.msra.mxu1 %v1809_v16  ;;  %1010 = vmatprep.subr.bf16.mxu0 %v2464_v27  ;;  %p2039_p2 = pnand %p2038_p4, %p2032_p7 }
  0xa9   : > { %542 = vmatprep.subr.bf16.mxu1 %v1810_v17 }
  0xab   : > { %1011 = vmatpush1.bf16.msra.mxu0 %v2468_v29 }
  0xac   : > { %543 = vmatpush1.bf16.msra.mxu1 %v1812_v20  ;;  %1012 = vmatprep.subr.bf16.mxu0 %v2471_v31 }
  0xad   : > { %544 = vmatprep.subr.bf16.mxu1 %v1813_v21 }
  0xaf   : > { %1013 = vmatpush1.bf16.msra.mxu0 %v2476_v32 }
  0xb0   : > { %545 = vmatpush1.bf16.msra.mxu1 %v1815_v24  ;;  %1014 = vmatprep.subr.bf16.mxu0 %v2480_v33 }
  0xb1   : > { %546 = vmatprep.subr.bf16.mxu1 %v1816_v25 }
  0xb3   : > { %1015 = vmatpush1.bf16.msra.mxu0 %v2486_v35 }
  0xb4   : > { %547 = vmatpush1.bf16.msra.mxu1 %v1818_v28  ;;  %1016 = vmatprep.subr.bf16.mxu0 %v2489_v36 }
  0xb5   : > { %778 = vmatprep.subr.bf16.mxu1 %v2441_v13 }
  0xb7   : > { %565 = vmatmul.mubr.bf16.vlgmr.msra.gmra.mrb[0].mxu1 %v1819_v30  ;;  %1017 = vmatpush1.bf16.msra.mxu0 %v2494_v37 }
  0xb8   : > { %779 = vmatpush1.bf16.msra.mxu1 %v2443_v14  ;;  %574 = vmatprep.mubr.bf16.mxu1 %v2159_v5 }
  0xb9   : > { %780 = vmatprep.subr.bf16.mxu1 %v2445_v15  ;;  %1077 = vmatprep.subr.bf16.mxu0 %v2441_v13 }
  0xbc   : > { %781 = vmatpush1.bf16.msra.mxu1 %v2450_v18 }
  0xbd   : > { %782 = vmatprep.subr.bf16.mxu1 %v2452_v19 }
  0xbf   : > { %575 = vmatmul.mubr.bf16.gmra.mrb[4].mxu1 %v1823_v34 }
  0xc0   : > { %584 = vmatprep.mubr.bf16.mxu1 %v2159_v5  ;;  %783 = vmatpush1.bf16.msra.mxu1 %v2456_v22 }
  0xc1   : > { %784 = vmatprep.subr.bf16.mxu1 %v2458_v23 }
  0xc4   : > { %785 = vmatpush1.bf16.msra.mxu1 %v2462_v26 }
  0xc5   : > { %786 = vmatprep.subr.bf16.mxu1 %v2464_v27 }
  0xc7   : > { %585 = vmatmul.mubr.bf16.gmra.mrb[8].mxu1 %v1827_v38 }
  0xc8   : > { %594 = vmatprep.mubr.bf16.mxu1 %v2159_v5  ;;  %787 = vmatpush1.bf16.msra.mxu1 %v2468_v29 }
  0xc9   : > { %788 = vmatprep.subr.bf16.mxu1 %v2471_v31 }
  0xcc   : > { %789 = vmatpush1.bf16.msra.mxu1 %v2476_v32 }
  0xcd   : > { %790 = vmatprep.subr.bf16.mxu1 %v2480_v33 }
  0xcf   : > { %595 = vmatmul.mubr.bf16.gmra.mrb[12].mxu1 %v1831_v39 }
  0xd0   : > { %604 = vmatprep.mubr.bf16.mxu1 %v2159_v5  ;;  %791 = vmatpush1.bf16.msra.mxu1 %v2486_v35 }
  0xd1   : > { %792 = vmatprep.subr.bf16.mxu1 %v2489_v36 }
  0xd4   : > { %793 = vmatpush1.bf16.msra.mxu1 %v2494_v37 }
  0xd5   : > { %852 = vmatprep.subr.bf16.mxu1 %v2441_v13 }
  0xd7   : > { %605 = vmatmul.mubr.bf16.gmra.mrb[16].mxu1 %v1835_v40 }
  0xd8   : > { %614 = vmatprep.mubr.bf16.mxu1 %v2159_v5 }
  0xdf   : > { %615 = vmatmul.mubr.bf16.gmra.mrb[20].mxu1 %v1839_v41 }
  0xe0   : > { %624 = vmatprep.mubr.bf16.mxu1 %v2159_v5 }
  0xe7   : > { %625 = vmatmul.mubr.bf16.gmra.mrb[24].mxu1 %v1843_v42 }
  0xe8   : > { %634 = vmatprep.mubr.bf16.mxu1 %v2159_v5 }
  0xef   : > { %635 = vmatmul.mubr.bf16.gmra.mrb[28].mxu1 %v1847_v43 }
  0xf0   : > { %810 = vmatprep.mubr.bf16.mxu1 %v2159_v5 }
  0xf7   : > { %811 = vmatmul.mubr.bf16.vlgmr.msra.gmra.mrb[0].mxu1 %v693_v44 }
  0xf8   : > { %853 = vmatpush1.bf16.msra.mxu1 %v2443_v14  ;;  %884 = vmatprep.mubr.bf16.mxu1 %v2159_v5 }
  0xf9   : > { %854 = vmatprep.subr.bf16.mxu1 %v2445_v15 }
  0xfc   : > { %855 = vmatpush1.bf16.msra.mxu1 %v2450_v18 }
  0xfd   : > { %856 = vmatprep.subr.bf16.mxu1 %v2452_v19 }
 0x100   : > { %857 = vmatpush1.bf16.msra.mxu1 %v2456_v22 }
 0x101   : > { %858 = vmatprep.subr.bf16.mxu1 %v2458_v23 }
 0x104   : > { %859 = vmatpush1.bf16.msra.mxu1 %v2462_v26 }
 0x105   : > { %860 = vmatprep.subr.bf16.mxu1 %v2464_v27 }
 0x108   : > { %861 = vmatpush1.bf16.msra.mxu1 %v2468_v29 }
 0x109   : > { %862 = vmatprep.subr.bf16.mxu1 %v2471_v31 }
 0x10c   : > { %863 = vmatpush1.bf16.msra.mxu1 %v2476_v32 }
 0x10d   : > { %864 = vmatprep.subr.bf16.mxu1 %v2480_v33 }
 0x110   : > { %865 = vmatpush1.bf16.msra.mxu1 %v2486_v35 }
 0x111   : > { %866 = vmatprep.subr.bf16.mxu1 %v2489_v36 }
 0x114   : > { %867 = vmatpush1.bf16.msra.mxu1 %v2494_v37 }
 0x115   : > { %927 = vmatprep.subr.bf16.mxu1 %v2441_v13 }
 0x1a2   : > { %v2540_v45 = vpop.f32.mrb[12].mxu1 }
 0x1a3   : > { %v2542_v46 = vpop.f32.mrb[13].mxu1 }
 0x1a4   : > { %v2544_v47 = vpop.f32.mrb[14].mxu1 }
 0x1a5   : > { %v2546_v48 = vpop.f32.mrb[15].mxu1 }
 0x1aa   : > { %v2548_v49 = vpop.f32.mrb[16].mxu1 }
 0x1ab   : > { %v2550_v50 = vpop.f32.mrb[17].mxu1 }
 0x1ac   : > { %v2552_v51 = vpop.f32.mrb[18].mxu1 }
 0x1ad   : > { %v2554_v52 = vpop.f32.mrb[19].mxu1 }
 0x1b2   : > { %v2556_v53 = vpop.f32.mrb[20].mxu1 }
 0x1b3   : > { %v2558_v54 = vpop.f32.mrb[21].mxu1 }
 0x1b4   : > { %v2560_v55 = vpop.f32.mrb[22].mxu1 }
 0x1b5   : > { %v2562_v56 = vpop.f32.mrb[23].mxu1 }
 0x1ba   : > { %v2564_v57 = vpop.f32.mrb[24].mxu1 }
 0x1bb   : > { %v2566_v58 = vpop.f32.mrb[25].mxu1 }
 0x1bc   : > { %v2568_v59 = vpop.f32.mrb[26].mxu1 }
 0x1bd   : > { %v2570_v60 = vpop.f32.mrb[27].mxu1 }
 0x1c2   : > { %v2572_v63 = vpop.f32.mrb[28].mxu1 }
 0x1c3   : > { %v2574_v0 = vpop.f32.mrb[29].mxu1 }
 0x1c4   : > { %v2576_v1 = vpop.f32.mrb[30].mxu1 }
 0x1c5   : > { %v2578_v2 = vpop.f32.mrb[31].mxu1 }
 0x1ca   : > { %v812_v8 = vpop.f32.mrb[0].mxu1 }
 0x1cb   : > { %v814_v10 = vpop.f32.mrb[1].mxu1  ;;  %v1624_v16 = vadd.f32 %v812_v8, %v2585_v9 }
 0x1cc   : > { %v2588_v11 = vadd.f32 %v814_v10, %v2583_v7  ;;  %v816_v12 = vpop.f32.mrb[2].mxu1 }
 0x1cd   : > { %v1626_v17 = vadd.f32 %v816_v12, %v2585_v9  ;;  %v818_v20 = vpop.f32.mrb[3].mxu1  ;;  %v597_v12 = vadd.f32 %v2540_v45, %v2585_v9 }
 0x1ce   : > { %825 = vmax.xlane.f32.xlu0 %v2588_v11  ;;  %v2594_v24 = vadd.f32 %v818_v20, %v2583_v7  ;;  %v601_v20 = vadd.f32 %v2544_v47, %v2585_v9  ;;  %v609_v47 = vadd.f32 %v2550_v50, %v2583_v7  ;;  %v617_v50 = vadd.f32 %v2556_v53, %v2585_v9 }
 0x1cf   : > { %v847_v21 = vpack.c.bf16 %v1626_v17, %v1624_v16  ;;  %v599_v16 = vadd.f32 %v2542_v46, %v2583_v7  ;;  %v607_v46 = vadd.f32 %v2548_v49, %v2585_v9 }
 0x1d1   : > { %885 = vmatmul.mubr.bf16.vlgmr.msra.gmra.mrb[4].mxu1 %v847_v21 }
 0x1d2   : > { %827 = vmax.xlane.f32.xlu0 %v2594_v24  ;;  %928 = vmatpush1.bf16.msra.mxu1 %v2443_v14 }
 0x1d3   : > { %929 = vmatprep.subr.bf16.mxu1 %v2445_v15  ;;  %959 = vmatprep.mubr.bf16.mxu1 %v2159_v5 }
 0x1d6   : > { %930 = vmatpush1.bf16.msra.mxu1 %v2450_v18 }
 0x1d7   : > { %931 = vmatprep.subr.bf16.mxu1 %v2452_v19 }
 0x1da   : > { %932 = vmatpush1.bf16.msra.mxu1 %v2456_v22 }
 0x1db   : > { %933 = vmatprep.subr.bf16.mxu1 %v2458_v23 }
 0x1de   : > { %934 = vmatpush1.bf16.msra.mxu1 %v2462_v26 }
 0x1df   : > { %935 = vmatprep.subr.bf16.mxu1 %v2464_v27 }
 0x1e2   : > { %936 = vmatpush1.bf16.msra.mxu1 %v2468_v29 }
 0x1e3   : > { %937 = vmatprep.subr.bf16.mxu1 %v2471_v31 }
 0x1e6   : > { %938 = vmatpush1.bf16.msra.mxu1 %v2476_v32 }
 0x1e7   : > { %939 = vmatprep.subr.bf16.mxu1 %v2480_v33 }
 0x1ea   : > { %940 = vmatpush1.bf16.msra.mxu1 %v2486_v35 }
 0x1eb   : > { %941 = vmatprep.subr.bf16.mxu1 %v2489_v36 }
 0x1ee   : > { %942 = vmatpush1.bf16.msra.mxu1 %v2494_v37 }
 0x2a4   : > { %v886_v25 = vpop.f32.mrb[4].mxu1 }
 0x2a5   : > { %v888_v28 = vpop.f32.mrb[5].mxu1  ;;  %v1628_v38 = vadd.f32 %v886_v25, %v2585_v9 }
 0x2a6   : > { %v2614_v30 = vadd.f32 %v888_v28, %v2583_v7  ;;  %v890_v34 = vpop.f32.mrb[6].mxu1  ;;  %v603_v28 = vadd.f32 %v2546_v48, %v2583_v7 }
 0x2a7   : > { %v1630_v39 = vadd.f32 %v890_v34, %v2585_v9  ;;  %v892_v40 = vpop.f32.mrb[7].mxu1 }
 0x2a8   : > { %899 = vmax.xlane.f32.xlu1 %v2614_v30  ;;  %v2620_v42 = vadd.f32 %v892_v40, %v2583_v7 }
 0x2a9   : > { %v922_v41 = vpack.c.bf16 %v1630_v39, %v1628_v38 }
 0x2ab   : > { %960 = vmatmul.mubr.bf16.vlgmr.msra.gmra.mrb[8].mxu1 %v922_v41 }
 0x2ac   : > { %901 = vmax.xlane.f32.xlu1 %v2620_v42 }
 0x37e   : > { %v961_v43 = vpop.f32.mrb[8].mxu1 }
 0x37f   : > { %v963_v44 = vpop.f32.mrb[9].mxu1  ;;  %v1632_v3 = vadd.f32 %v961_v43, %v2585_v9  ;;  %v611_v43 = vadd.f32 %v2552_v51, %v2585_v9  ;;  %v619_v51 = vadd.f32 %v2558_v54, %v2583_v7 }
 0x380   : > { %v2624_v61 = vadd.f32 %v963_v44, %v2583_v7  ;;  %v965_v62 = vpop.f32.mrb[10].mxu1 }
 0x381   : > { %v1634_v4 = vadd.f32 %v965_v62, %v2585_v9  ;;  %v967_v6 = vpop.f32.mrb[11].mxu1 }
 0x382   : > { %v2629_v8 = vadd.f32 %v967_v6, %v2583_v7  ;;  %974 = vmax.xlane.f32.xlu0 %v2624_v61 }
 0x383   : > { %v997_v10 = vpack.c.bf16 %v1634_v4, %v1632_v3  ;;  %v613_v3 = vadd.f32 %v2554_v52, %v2583_v7 }
 0x384   : > { %976 = vmax.xlane.f32.xlu1 %v2629_v8 }
 0x385   : > { %1035 = vmatmul.mubr.bf16.vlgmr.msra.gmra.mrb[0].mxu0 %v997_v10 }
 0x386   : > { %1078 = vmatpush1.bf16.msra.mxu0 %v2443_v14  ;;  %1109 = vmatprep.mubr.bf16.mxu0 %v2159_v5 }
 0x387   : > { %1079 = vmatprep.subr.bf16.mxu0 %v2445_v15 }
 0x38a   : > { %1080 = vmatpush1.bf16.msra.mxu0 %v2450_v18 }
 0x38b   : > { %1081 = vmatprep.subr.bf16.mxu0 %v2452_v19 }
 0x38e   : > { %1082 = vmatpush1.bf16.msra.mxu0 %v2456_v22 }
 0x38f   : > { %1083 = vmatprep.subr.bf16.mxu0 %v2458_v23 }
 0x392   : > { %1084 = vmatpush1.bf16.msra.mxu0 %v2462_v26 }
 0x393   : > { %1085 = vmatprep.subr.bf16.mxu0 %v2464_v27 }
 0x396   : > { %1086 = vmatpush1.bf16.msra.mxu0 %v2468_v29 }
 0x397   : > { %1087 = vmatprep.subr.bf16.mxu0 %v2471_v31 }
 0x39a   : > { %1088 = vmatpush1.bf16.msra.mxu0 %v2476_v32 }
 0x39b   : > { %1089 = vmatprep.subr.bf16.mxu0 %v2480_v33 }
 0x39e   : > { %1090 = vmatpush1.bf16.msra.mxu0 %v2486_v35 }
 0x39f   : > { %1091 = vmatprep.subr.bf16.mxu0 %v2489_v36 }
 0x3a2   : > { %1092 = vmatpush1.bf16.msra.mxu0 %v2494_v37 }
 0x3a3   : > { %1152 = vmatprep.subr.bf16.mxu0 %v2441_v13 }
 0x458   : > { %v1036_v17 = vpop.f32.mrb[0].mxu0 }
 0x459   : > { %v1045_v21 = vadd.f32 %v1036_v17, %v597_v12  ;;  %v1038_v25 = vpop.f32.mrb[1].mxu0  ;;  %v621_v17 = vadd.f32 %v2560_v55, %v2585_v9 }
 0x45a   : > { %v2658_v34 = vadd.f32 %v1038_v25, %v599_v16  ;;  %v1040_v38 = vpop.f32.mrb[2].mxu0  ;;  %v623_v25 = vadd.f32 %v2562_v56, %v2583_v7 }
 0x45b   : > { %v1047_v39 = vadd.f32 %v1040_v38, %v601_v20  ;;  %v1042_v40 = vpop.f32.mrb[3].mxu0 }
 0x45c   : > { %v2660_v41 = vadd.f32 %v1042_v40, %v603_v28  ;;  %1049 = vmax.xlane.f32.xlu0 %v2658_v34 }
 0x45d   : > { %v1072_v45 = vpack.c.bf16 %v1047_v39, %v1045_v21 }
 0x45e   : > { %1051 = vmax.xlane.f32.xlu1 %v2660_v41 }
 0x45f   : > { %1110 = vmatmul.mubr.bf16.vlgmr.msra.gmra.mrb[4].mxu0 %v1072_v45 }
 0x460   : > { %1153 = vmatpush1.bf16.msra.mxu0 %v2443_v14  ;;  %1184 = vmatprep.mubr.bf16.mxu0 %v2159_v5 }
 0x461   : > { %1154 = vmatprep.subr.bf16.mxu0 %v2445_v15 }
 0x464   : > { %1155 = vmatpush1.bf16.msra.mxu0 %v2450_v18 }
 0x465   : > { %1156 = vmatprep.subr.bf16.mxu0 %v2452_v19 }
 0x468   : > { %1157 = vmatpush1.bf16.msra.mxu0 %v2456_v22 }
 0x469   : > { %1158 = vmatprep.subr.bf16.mxu0 %v2458_v23 }
 0x46c   : > { %1159 = vmatpush1.bf16.msra.mxu0 %v2462_v26 }
 0x46d   : > { %1160 = vmatprep.subr.bf16.mxu0 %v2464_v27 }
 0x470   : > { %1161 = vmatpush1.bf16.msra.mxu0 %v2468_v29 }
 0x471   : > { %1162 = vmatprep.subr.bf16.mxu0 %v2471_v31 }
 0x474   : > { %1163 = vmatpush1.bf16.msra.mxu0 %v2476_v32 }
 0x475   : > { %1164 = vmatprep.subr.bf16.mxu0 %v2480_v33 }
 0x478   : > { %1165 = vmatpush1.bf16.msra.mxu0 %v2486_v35 }
 0x479   : > { %1166 = vmatprep.subr.bf16.mxu0 %v2489_v36 }
 0x47c   : > { %1167 = vmatpush1.bf16.msra.mxu0 %v2494_v37 }
 0x47d   : > { %1227 = vmatprep.subr.bf16.mxu0 %v2441_v13 }
 0x532   : > { %v1111_v48 = vpop.f32.mrb[4].mxu0 }
 0x533   : > { %v1120_v44 = vadd.f32 %v1111_v48, %v607_v46  ;;  %v1113_v62 = vpop.f32.mrb[5].mxu0  ;;  %v637_v48 = vadd.f32 %v2572_v63, %v2585_v9 }
 0x534   : > { %v2689_v4 = vadd.f32 %v1113_v62, %v609_v47  ;;  %v1115_v6 = vpop.f32.mrb[6].mxu0 }
 0x535   : > { %v1122_v10 = vadd.f32 %v1115_v6, %v611_v43  ;;  %v1117_v12 = vpop.f32.mrb[7].mxu0 }
 0x536   : > { %v2691_v16 = vadd.f32 %v1117_v12, %v613_v3  ;;  %1124 = vmax.xlane.f32.xlu0 %v2689_v4 }
 0x537   : > { %v1147_v49 = vpack.c.bf16 %v1122_v10, %v1120_v44  ;;  %v641_v44 = vadd.f32 %v2576_v1, %v2585_v9 }
 0x538   : > { %1126 = vmax.xlane.f32.xlu1 %v2691_v16 }
 0x539   : > { %1185 = vmatmul.mubr.bf16.vlgmr.msra.gmra.mrb[8].mxu0 %v1147_v49 }
 0x53a   : > { %1228 = vmatpush1.bf16.msra.mxu0 %v2443_v14  ;;  %1259 = vmatprep.mubr.bf16.mxu0 %v2159_v5 }
 0x53b   : > { %1229 = vmatprep.subr.bf16.mxu0 %v2445_v15 }
 0x53e   : > { %1230 = vmatpush1.bf16.msra.mxu0 %v2450_v18 }
 0x53f   : > { %1231 = vmatprep.subr.bf16.mxu0 %v2452_v19 }
 0x542   : > { %1232 = vmatpush1.bf16.msra.mxu0 %v2456_v22 }
 0x543   : > { %1233 = vmatprep.subr.bf16.mxu0 %v2458_v23 }
 0x546   : > { %1234 = vmatpush1.bf16.msra.mxu0 %v2462_v26 }
 0x547   : > { %1235 = vmatprep.subr.bf16.mxu0 %v2464_v27 }
 0x54a   : > { %1236 = vmatpush1.bf16.msra.mxu0 %v2468_v29 }
 0x54b   : > { %1237 = vmatprep.subr.bf16.mxu0 %v2471_v31 }
 0x54e   : > { %1238 = vmatpush1.bf16.msra.mxu0 %v2476_v32 }
 0x54f   : > { %1239 = vmatprep.subr.bf16.mxu0 %v2480_v33 }
 0x552   : > { %1240 = vmatpush1.bf16.msra.mxu0 %v2486_v35 }
 0x553   : > { %1241 = vmatprep.subr.bf16.mxu0 %v2489_v36 }
 0x556   : > { %1242 = vmatpush1.bf16.msra.mxu0 %v2494_v37 }
 0x557   : > { %1302 = vmatprep.subr.bf16.mxu0 %v2441_v13 }
 0x60c   : > { %v1186_v52 = vpop.f32.mrb[8].mxu0 }
 0x60d   : > { %v1195_v20 = vadd.f32 %v1186_v52, %v617_v50  ;;  %v1188_v21 = vpop.f32.mrb[9].mxu0 }
 0x60e   : > { %v2720_v28 = vadd.f32 %v1188_v21, %v619_v51  ;;  %v1190_v38 = vpop.f32.mrb[10].mxu0 }
 0x60f   : > { %v1197_v39 = vadd.f32 %v1190_v38, %v621_v17  ;;  %v1192_v13 = vpop.f32.mrb[11].mxu0 }
 0x610   : > { %v2722_v40 = vadd.f32 %v1192_v13, %v623_v25  ;;  %1199 = vmax.xlane.f32.xlu0 %v2720_v28 }
 0x611   : > { %v1222_v53 = vpack.c.bf16 %v1197_v39, %v1195_v20 }
 0x612   : > { %1201 = vmax.xlane.f32.xlu1 %v2722_v40 }
 0x613   : > { %1260 = vmatmul.mubr.bf16.vlgmr.msra.gmra.mrb[12].mxu0 %v1222_v53 }
 0x614   : > { %1303 = vmatpush1.bf16.msra.mxu0 %v2443_v14  ;;  %1334 = vmatprep.mubr.bf16.mxu0 %v2159_v5  ;;  %v627_v5 = vadd.f32 %v2564_v57, %v2585_v9  ;;  %v629_v14 = vadd.f32 %v2566_v58, %v2583_v7 }
 0x615   : > { %1304 = vmatprep.subr.bf16.mxu0 %v2445_v15 }
 0x618   : > { %1305 = vmatpush1.bf16.msra.mxu0 %v2450_v18  ;;  %v631_v18 = vadd.f32 %v2568_v59, %v2585_v9 }
 0x619   : > { %1306 = vmatprep.subr.bf16.mxu0 %v2452_v19 }
 0x61c   : > { %1307 = vmatpush1.bf16.msra.mxu0 %v2456_v22 }
 0x61d   : > { %1308 = vmatprep.subr.bf16.mxu0 %v2458_v23  ;;  %v633_v23 = vadd.f32 %v2570_v60, %v2583_v7 }
 0x620   : > { %1309 = vmatpush1.bf16.msra.mxu0 %v2462_v26 }
 0x621   : > { %1310 = vmatprep.subr.bf16.mxu0 %v2464_v27 }
 0x624   : > { %1311 = vmatpush1.bf16.msra.mxu0 %v2468_v29 }
 0x625   : > { %1312 = vmatprep.subr.bf16.mxu0 %v2471_v31 }
 0x628   : > { %1313 = vmatpush1.bf16.msra.mxu0 %v2476_v32 }
 0x629   : > { %1314 = vmatprep.subr.bf16.mxu0 %v2480_v33 }
 0x62c   : > { %1315 = vmatpush1.bf16.msra.mxu0 %v2486_v35  ;;  %v826_v35 = vpop.xlane.xlu0 %825 }
 0x62d   : > { %1316 = vmatprep.subr.bf16.mxu0 %v2489_v36  ;;  %v900_v36 = vpop.xlane.xlu1 %899  ;;  %v2757_v54 = vsub.f32 %v2588_v11, %v826_v35 }
 0x62e   : > { %v2764_v58 = vsub.f32 %v2614_v30, %v900_v36 }
 0x62f   : > { %v831_v57 = vmul.f32 1.442695, %v2757_v54 }
 0x630   : > { %1317 = vmatpush1.bf16.msra.mxu0 %v2494_v37  ;;  %v828_v37 = vpop.xlane.xlu0 %827  ;;  %v905_v11 = vmul.f32 1.442695, %v2764_v58 }
 0x631   : > { %v2760_v55 = vsub.f32 %v2594_v24, %v828_v37  ;;  %v902_v56 = vpop.xlane.xlu1 %901  ;;  %1851 = vpow2.f32 %v831_v57 }
 0x632   : > { %v2768_v45 = vsub.f32 %v2620_v42, %v902_v56  ;;  %v639_v42 = vadd.f32 %v2574_v0, %v2583_v7 }
 0x633   : > { %v833_v60 = vmul.f32 1.442695, %v2760_v55 }
 0x634   : > { %v975_v59 = vpop.xlane.xlu0 %974  ;;  %v907_v30 = vmul.f32 1.442695, %v2768_v45 }
 0x635   : > { %v977_v46 = vpop.xlane.xlu1 %976  ;;  %v2772_v47 = vsub.f32 %v2624_v61, %v975_v59  ;;  %1853 = vpow2.f32 %v833_v60 }
 0x636   : > { %v2778_v43 = vsub.f32 %v2629_v8, %v977_v46  ;;  %1855 = vpow2.f32 %v905_v11  ;;  %v643_v8 = vadd.f32 %v2578_v2, %v2583_v7 }
 0x637   : > { %v980_v61 = vmul.f32 1.442695, %v2772_v47  ;;  %1857 = vpow2.f32 %v907_v30 }
 0x638   : > { %v1050_v24 = vpop.xlane.xlu0 %1049  ;;  %v982_v1 = vmul.f32 1.442695, %v2778_v43 }
 0x639   : > { %v1052_v62 = vpop.xlane.xlu1 %1051  ;;  %v2786_v6 = vsub.f32 %v2658_v34, %v1050_v24  ;;  %1859 = vpow2.f32 %v980_v61 }
 0x63a   : > { %v2794_v9 = vsub.f32 %v2660_v41, %v1052_v62  ;;  %1861 = vpow2.f32 %v982_v1 }
 0x63b   : > { %v1055_v2 = vmul.f32 1.442695, %v2786_v6  ;;  %v1852_v41 = vpop.eup %1851 }
 0x63c   : > { %v1125_v12 = vpop.xlane.xlu0 %1124  ;;  %v1057_v21 = vmul.f32 1.442695, %v2794_v9 }
 0x63d   : > { %v1127_v34 = vpop.xlane.xlu1 %1126  ;;  %v2801_v7 = vsub.f32 %v2689_v4, %v1125_v12  ;;  %1863 = vpow2.f32 %v1055_v2 }
 0x63e   : > { %v2806_v25 = vsub.f32 %v2691_v16, %v1127_v34  ;;  %1865 = vpow2.f32 %v1057_v21 }
 0x63f   : > { %v1854_v39 = vpop.eup %1853  ;;  %v1130_v4 = vmul.f32 1.442695, %v2801_v7 }
 0x641   : > { %1867 = vpow2.f32 %v1130_v4 }
 0x69d   : > { %v1200_v20 = vpop.xlane.xlu0 %1199 }
 0x69e   : > { %v2810_v13 = vsub.f32 %v2720_v28, %v1200_v20 }
 0x69f   : > { %v1202_v38 = vpop.xlane.xlu1 %1201 }
 0x6e6   : > { %v1261_v15 = vpop.f32.mrb[12].mxu0 }
 0x6e7   : > { %v1270_v19 = vadd.f32 %v1261_v15, %v627_v5  ;;  %v1263_v22 = vpop.f32.mrb[13].mxu0  ;;  %v1856_v5 = vpop.eup %1855  ;;  %v2814_v15 = vsub.f32 %v2722_v40, %v1202_v38 }
 0x6e8   : > { %v2750_v26 = vadd.f32 %v1263_v22, %v629_v14  ;;  %v1265_v27 = vpop.f32.mrb[14].mxu0  ;;  %v1132_v14 = vmul.f32 1.442695, %v2806_v25 }
 0x6e9   : > { %v1272_v29 = vadd.f32 %v1265_v27, %v631_v18  ;;  %v1267_v31 = vpop.f32.mrb[15].mxu0  ;;  %v1858_v18 = vpop.eup %1857 }
 0x6ea   : > { %v2752_v32 = vadd.f32 %v1267_v31, %v633_v23  ;;  %1274 = vmax.xlane.f32.xlu0 %v2750_v26  ;;  %v1860_v28 = vpop.eup %1859  ;;  %1869 = vpow2.f32 %v1132_v14  ;;  %v1207_v23 = vmul.f32 1.442695, %v2814_v15 }
 0x6eb   : > { %v1297_v33 = vpack.c.bf16 %v1272_v29, %v1270_v19  ;;  %v1205_v19 = vmul.f32 1.442695, %v2810_v13  ;;  %v1862_v40 = vpop.eup %1861 }
 0x6ec   : > { %1276 = vmax.xlane.f32.xlu1 %v2752_v32  ;;  %v1864_v31 = vpop.eup %1863 }
 0x6ed   : > { %1335 = vmatmul.mubr.bf16.vlgmr.msra.gmra.mrb[16].mxu0 %v1297_v33  ;;  %1871 = vpow2.f32 %v1205_v19 }
 0x6ee   : > { %1873 = vpow2.f32 %v1207_v23 }
 0x777   : > { %v1275_v53 = vpop.xlane.xlu0 %1274 }
 0x778   : > { %v2818_v22 = vsub.f32 %v2750_v26, %v1275_v53  ;;  %v1866_v26 = vpop.eup %1865 }
 0x779   : > { %v1277_v16 = vpop.xlane.xlu1 %1276  ;;  %v1868_v35 = vpop.eup %1867 }
 0x77a   : > { %v2822_v27 = vsub.f32 %v2752_v32, %v1277_v16  ;;  %v1280_v29 = vmul.f32 1.442695, %v2818_v22  ;;  %v1870_v36 = vpop.eup %1869 }
 0x77b   : > { %v1872_v32 = vpop.eup %1871 }
 0x77c   : > { %v1282_v33 = vmul.f32 1.442695, %v2822_v27  ;;  %1875 = vpow2.f32 %v1280_v29  ;;  %v1874_v37 = vpop.eup %1873 }
 0x77e   : > { %1877 = vpow2.f32 %v1282_v33 }
 0x786   : > { %v1876_v56 = vpop.eup %1875 }
 0x788   : > { %v1878_v57 = vpop.eup %1877 }
 0x7c0   : > { %v1336_v3 = vpop.f32.mrb[16].mxu0 }
 0x7c1   : > { %v1345_v63 = vadd.f32 %v1336_v3, %v637_v48  ;;  %v1338_v10 = vpop.f32.mrb[17].mxu0 }
 0x7c2   : > { %v2790_v49 = vadd.f32 %v1338_v10, %v639_v42  ;;  %v1340_v0 = vpop.f32.mrb[18].mxu0 }
 0x7c3   : > { %1374 = vst [vmem:[#allocation13] sm:$0xff] %v1345_v63  ;;  %v1347_v50 = vadd.f32 %v1340_v0, %v641_v44  ;;  %v1342_v51 = vpop.f32.mrb[19].mxu0 }
 0x7c4   : > { %v2796_v52 = vadd.f32 %v1342_v51, %v643_v8  ;;  %1349 = vmax.xlane.f32.xlu0 %v2790_v49 }
 0x7c5   : > { %v1372_v17 = vpack.c.bf16 %v1347_v50, %v1345_v63  ;;  %1375 = vst [vmem:[#allocation13 + $0x8] sm:$0xff] %v1347_v50 }
 0x7c6   : > { %1351 = vmax.xlane.f32.xlu1 %v2796_v52 }
 0x7c7   : > { %1373 = vst [vmem:[#allocation2] sm:$0xff] %v1372_v17 }
 0x7c8   : > { %835 = vadd.xlane.f32.xlu0 %v1852_v41 }
 0x7ca   : > { %837 = vadd.xlane.f32.xlu1 %v1854_v39 }
 0x7cc   : > { %909 = vadd.xlane.f32.xlu0 %v1856_v5 }
 0x7ce   : > { %911 = vadd.xlane.f32.xlu1 %v1858_v18 }
 0x7d0   : > { %984 = vadd.xlane.f32.xlu0 %v1860_v28 }
 0x7d2   : > { %986 = vadd.xlane.f32.xlu1 %v1862_v40 }
 0x7d4   : > { %1059 = vadd.xlane.f32.xlu0 %v1864_v31 }
 0x7d6   : > { %1061 = vadd.xlane.f32.xlu1 %v1866_v26 }
 0x7d8   : > { %1134 = vadd.xlane.f32.xlu0 %v1868_v35 }
 0x7da   : > { %1136 = vadd.xlane.f32.xlu1 %v1870_v36 }
 0x7dc   : > { %1209 = vadd.xlane.f32.xlu0 %v1872_v32 }
 0x7de   : > { %1211 = vadd.xlane.f32.xlu1 %v1874_v37 }
 0x7e0   : > { %1284 = vadd.xlane.f32.xlu0 %v1876_v56 }
 0x7e2   : > { %1286 = vadd.xlane.f32.xlu1 %v1878_v57 }
 0x851   : > { %v1350_v59 = vpop.xlane.xlu0 %1349 }
 0x852   : > { %v2827_v60 = vsub.f32 %v2790_v49, %v1350_v59 }
 0x853   : > { %v1352_v46 = vpop.xlane.xlu1 %1351 }
 0x854   : > { %v1355_v11 = vmul.f32 1.442695, %v2827_v60  ;;  %v2831_v24 = vsub.f32 %v2796_v52, %v1352_v46 }
 0x855   : > { %v836_v48 = vpop.xlane.xlu0 %835 }
 0x856   : > { %1879 = vpow2.f32 %v1355_v11  ;;  %v1357_v30 = vmul.f32 1.442695, %v2831_v24 }
 0x857   : > { %1881 = vlog2.f32 %v836_v48  ;;  %v838_v42 = vpop.xlane.xlu1 %837 }
 0x858   : > { %1883 = vpow2.f32 %v1357_v30 }
 0x859   : > { %1885 = vlog2.f32 %v838_v42  ;;  %v910_v44 = vpop.xlane.xlu0 %909 }
 0x85a   : > { %1887 = vlog2.f32 %v910_v44 }
 0x85b   : > { %v912_v62 = vpop.xlane.xlu1 %911 }
 0x85c   : > { %1889 = vlog2.f32 %v912_v62 }
 0x85d   : > { %v985_v3 = vpop.xlane.xlu0 %984 }
 0x85e   : > { %1891 = vlog2.f32 %v985_v3 }
 0x85f   : > { %v987_v61 = vpop.xlane.xlu1 %986 }
 0x860   : > { %v1880_v63 = vpop.eup %1879  ;;  %1893 = vlog2.f32 %v987_v61 }
 0x861   : > { %v1882_v10 = vpop.eup %1881  ;;  %1359 = vadd.xlane.f32.xlu0 %v1880_v63  ;;  %v1060_v8 = vpop.xlane.xlu0 %1059 }
 0x862   : > { %v1884_v12 = vpop.eup %1883  ;;  %v840_v49 = vmul.f32 0.6931472, %v1882_v10  ;;  %1895 = vlog2.f32 %v1060_v8 }
 0x863   : > { %v1886_v0 = vpop.eup %1885  ;;  %1361 = vadd.xlane.f32.xlu1 %v1884_v12  ;;  %v1062_v1 = vpop.xlane.xlu1 %1061 }
 0x864   : > { %v1888_v50 = vpop.eup %1887  ;;  %v843_v51 = vsub.f32 %v2757_v54, %v840_v49  ;;  %v842_v34 = vmul.f32 0.6931472, %v1886_v0  ;;  %1897 = vlog2.f32 %v1062_v1 }
 0x865   : > { %v914_v52 = vmul.f32 0.6931472, %v1888_v50  ;;  %v1135_v2 = vpop.xlane.xlu0 %1134 }
 0x866   : > { %v1890_v17 = vpop.eup %1889  ;;  %845 = vst [vmem:[%s2436_s10] sm:$0xff] %v843_v51  ;;  %v844_v20 = vsub.f32 %v2760_v55, %v842_v34  ;;  %1899 = vlog2.f32 %v1135_v2 }
 0x867   : > { %v917_v41 = vsub.f32 %v2764_v58, %v914_v52  ;;  %v916_v21 = vmul.f32 0.6931472, %v1890_v17  ;;  %v1137_v38 = vpop.xlane.xlu1 %1136 }
 0x868   : > { %v1892_v39 = vpop.eup %1891  ;;  %846 = vst [vmem:[%s2436_s10 + $0x8] sm:$0xff] %v844_v20  ;;  %1901 = vlog2.f32 %v1137_v38 }
 0x869   : > { %1598 = vst [vmem:[%s2436_s10 + $0x10] sm:$0xff] %v917_v41  ;;  %v918_v54 = vsub.f32 %v2768_v45, %v916_v21  ;;  %v989_v4 = vmul.f32 0.6931472, %v1892_v39  ;;  %v1210_v53 = vpop.xlane.xlu0 %1209 }
 0x86a   : > { %v1894_v5 = vpop.eup %1893  ;;  %1903 = vlog2.f32 %v1210_v53 }
 0x86b   : > { %1599 = vst [vmem:[%s2436_s10 + $0x18] sm:$0xff] %v918_v54  ;;  %v992_v55 = vsub.f32 %v2772_v47, %v989_v4  ;;  %v991_v14 = vmul.f32 0.6931472, %v1894_v5  ;;  %v1212_v58 = vpop.xlane.xlu1 %1211 }
 0x86c   : > { %v1896_v16 = vpop.eup %1895  ;;  %1905 = vlog2.f32 %v1212_v58 }
 0x86d   : > { %1600 = vst [vmem:[%s2436_s10 + $0x20] sm:$0xff] %v992_v55  ;;  %v993_v18 = vsub.f32 %v2778_v43, %v991_v14  ;;  %v1064_v19 = vmul.f32 0.6931472, %v1896_v16  ;;  %v1285_v28 = vpop.xlane.xlu0 %1284 }
 0x86e   : > { %v1898_v45 = vpop.eup %1897  ;;  %1907 = vlog2.f32 %v1285_v28 }
 0x86f   : > { %1601 = vst [vmem:[%s2436_s10 + $0x28] sm:$0xff] %v993_v18  ;;  %v1067_v23 = vsub.f32 %v2786_v6, %v1064_v19  ;;  %v1066_v40 = vmul.f32 0.6931472, %v1898_v45  ;;  %v1287_v47 = vpop.xlane.xlu1 %1286 }
 0x870   : > { %v1900_v29 = vpop.eup %1899  ;;  %1909 = vlog2.f32 %v1287_v47 }
 0x871   : > { %1602 = vst [vmem:[%s2436_s10 + $0x30] sm:$0xff] %v1067_v23  ;;  %v1068_v31 = vsub.f32 %v2794_v9, %v1066_v40  ;;  %v1139_v33 = vmul.f32 0.6931472, %v1900_v29 }
 0x872   : > { %v1902_v26 = vpop.eup %1901 }
 0x873   : > { %1603 = vst [vmem:[%s2436_s10 + $0x38] sm:$0xff] %v1068_v31  ;;  %v1142_v43 = vsub.f32 %v2801_v7, %v1139_v33  ;;  %v1141_v35 = vmul.f32 0.6931472, %v1902_v26 }
 0x874   : > { %v1904_v36 = vpop.eup %1903 }
 0x875   : > { %1604 = vst [vmem:[%s2436_s10 + $0x40] sm:$0xff] %v1142_v43  ;;  %v1143_v6 = vsub.f32 %v2806_v25, %v1141_v35  ;;  %v1214_v32 = vmul.f32 0.6931472, %v1904_v36 }
 0x876   : > { %v1906_v37 = vpop.eup %1905 }
 0x877   : > { %1605 = vst [vmem:[%s2436_s10 + $0x48] sm:$0xff] %v1143_v6  ;;  %v1217_v56 = vsub.f32 %v2810_v13, %v1214_v32  ;;  %v1216_v57 = vmul.f32 0.6931472, %v1906_v37 }
 0x878   : > { %v1908_v9 = vpop.eup %1907 }
 0x879   : > { %1606 = vst [vmem:[%s2436_s10 + $0x50] sm:$0xff] %v1217_v56  ;;  %v1218_v59 = vsub.f32 %v2814_v15, %v1216_v57  ;;  %v1289_v46 = vmul.f32 0.6931472, %v1908_v9 }
 0x87a   : > { %v1910_v7 = vpop.eup %1909 }
 0x87b   : > { %1607 = vst [vmem:[%s2436_s10 + $0x58] sm:$0xff] %v1218_v59  ;;  %v1292_v11 = vsub.f32 %v2818_v22, %v1289_v46  ;;  %v1291_v48 = vmul.f32 0.6931472, %v1910_v7 }
 0x87d   : > { %1608 = vst [vmem:[%s2436_s10 + $0x60] sm:$0xff] %v1292_v11  ;;  %v1293_v25 = vsub.f32 %v2822_v27, %v1291_v48 }
 0x87f   : > { %1609 = vst [vmem:[%s2436_s10 + $0x68] sm:$0xff] %v1293_v25 }
 0x880   : > { %2042 = shalt.err (!%p2039_p2)
}
 0x881   : > { %s2043_s28 = scalar_lea.hbm %s2956_s6, 256 }
 0x882   : > { %p2044_p8 = scmp.ne.s32.totalorder %s2956_s6, %s2043_s28  ;;  %p2049_p11 = scmp.lt.u32.totalorder %s2043_s28, %s2956_s6 }
 0x884   : > { %p2045_p12 = pnand %p2044_p8, %p2981_p3 }
 0x886   : > { %p2046_p1 = pneg %p2045_p12 }
 0x888   : > { %p2051_p13 = pnand %p2049_p11, %p2046_p1 }
 0x88a   : > { %2054 = shalt.err (!%p2051_p13)
}
 0x88b   : > { %s2161_s8 = smov 128   ;;  %s2162_s9 = smov 8  }
 0x88c   : > { %1704 = dma.vmem_to_hbm [thread:$0]  (%p2981_p3), %s1410_s11, 256, %s2956_s6, [#allocation14], %s2161_s8, %s2161_s8, %s2162_s9  }
 0x88d   : > { %s1623_s15 = sshll.u32 %s2141_s24, 11  ;;  %s1393_s14 = sshll.u32 %s2436_s10, 4  ;;  %s2893_s14 = int_to_ptr.vmem [resolvable:$true] %s1393_s14 }
 0x88e   : > { %s2982_s13 = sld [smem:[#allocation22_spill]]  ;;  %s1377_s5 = scalar_lea.sflag [#allocation6], %s2417_s16 }
 0x88f   : > { %s2055_s24 = scalar_lea.vmem %s2893_s14, 2048  ;;  %s2163_s19 = smov [#allocation12]  }
 0x890   : > { %p2056_p6 = scmp.ne.s32.totalorder %s2893_s14, %s2055_s24  ;;  %s2059_s17 = sshll.u32 %s2163_s19, 4  ;;  %s2060_s17 = int_to_ptr.vmem [resolvable:$false] %s2059_s17 }
 0x891   : > { %s2061_s20 = scalar_lea.vmem %s2060_s17, 4096  ;;  %p2062_p9 = scmp.lt.s32.totalorder %s2893_s14, %s2060_s17 }
 0x892   : > { %p2057_p5 = pnand %p2056_p6, %p2359_p10  ;;  %p2063_p0 = scmp.lt.s32.totalorder %s2061_s20, %s2055_s24 }
 0x894   : > { %s2891_s28 = scalar_lea.hbm %s2982_s13, %s1623_s15  ;;  %p2058_p7 = pneg %p2057_p5 }
 0x895   : > { %p2064_p4 = por %p2063_p0, %p2062_p9 }
 0x897   : > { %p2065_p2 = pnand %p2064_p4, %p2058_p7 }
 0x8ee   : > { %v1360_v13 = vpop.xlane.xlu0 %1359 }
 0x8ef   : > { %1911 = vlog2.f32 %v1360_v13 }
 0x8f0   : > { %v1362_v15 = vpop.xlane.xlu1 %1361 }
 0x8f1   : > { %1913 = vlog2.f32 %v1362_v15 }
 0x8f9   : > { %v1912_v22 = vpop.eup %1911 }
 0x8fa   : > { %v1364_v27 = vmul.f32 0.6931472, %v1912_v22 }
 0x8fb   : > { %v1914_v30 = vpop.eup %1913 }
 0x8fc   : > { %v1367_v42 = vsub.f32 %v2827_v60, %v1364_v27  ;;  %v1366_v44 = vmul.f32 0.6931472, %v1914_v30 }
 0x8fe   : > { %1610 = vst [vmem:[%s2436_s10 + $0x70] sm:$0xff] %v1367_v42  ;;  %v1368_v62 = vsub.f32 %v2831_v24, %v1366_v44 }
 0x900   : > { %1611 = vst [vmem:[%s2436_s10 + $0x78] sm:$0xff] %v1368_v62 }
 0x901   : > { %2068 = shalt.err (!%p2065_p2)
}
 0x902   : > { %s2069_s10 = scalar_lea.hbm %s2891_s28, 2048  ;;  %s2073_s15 = scalar_lea.hbm %s2982_s13, 4096 }
 0x903   : > { %p2070_p8 = scmp.ne.s32.totalorder %s2891_s28, %s2069_s10  ;;  %p2074_p11 = scmp.lt.u32.totalorder %s2891_s28, %s2982_s13 }
 0x904   : > { %p2075_p13 = scmp.lt.u32.totalorder %s2073_s15, %s2069_s10  ;;  %p2077_p5 = scmp.lt.u32.totalorder %s2069_s10, %s2891_s28 }
 0x905   : > { %p2071_p12 = pnand %p2070_p8, %p2359_p10 }
 0x906   : > { %p2076_p6 = por %p2075_p13, %p2074_p11 }
 0x907   : > { %p2072_p1 = pneg %p2071_p12 }
 0x908   : > { %p2078_p7 = por %p2077_p5, %p2076_p6 }
 0x90a   : > { %p2079_p9 = pnand %p2078_p7, %p2072_p1 }
 0x90c   : > { %2082 = shalt.err (!%p2079_p9)
}
 0x90d   : > { %1702 = dma.vmem_to_hbm [thread:$0]  (%p2359_p10), %s2893_s14, 2048, %s2891_s28, %s1377_s5, %s2161_s8, %s2161_s8, %s2162_s9  }
 0x90e   : > { %2120 = dma.done.wait (%p2981_p3), [#allocation14], 256  }
 0x90f   : > { %2122 = vsyncadd (%p2981_p3), [#allocation14], 4294967040 }
 0x910 PF: > { %s2983_s24 = sld [smem:[#allocation20_spill]]  ;;  %s2984_s19 = sld [smem:[#allocation21_spill]] }
 0x911   : > { %p2986_p4 = scmp.ge.s32.totalorder %s2149_s26, 2 }
 0x916   : > { %s1428_s17 = sand.u32 1, %s2983_s24   ;;  %p2985_p0 = scmp.ne.s32.totalorder %s2984_s19, 0 }
 0x917   : > { %s1429_s21 = scalar_lea.sflag [#allocation6], %s1428_s17 }
 0x918   : > { %p1723_p2 = pnand %p2986_p4, %p2985_p0 }
 0x91a   : > { %2124 = dma.done.wait (!%p1723_p2), %s1429_s21, 2048  }
 0x91b   : > { %2126 = vsyncadd (!%p1723_p2), %s1429_s21, 4294965248  ;;  %s26_s26 = sadd.s32 1, %s2149_s26   ;;  %s2987_s21 = smov %s2133_s22 }
 0x91c   : > { %p23_p8 = scmp.ge.s32.totalorder %s26_s26, 4   ;;  %s2988_s22 = smov %s2137_s23 }
 0x91d   : > { %s2989_s23 = smov %s2371_s18  ;;  %s2990_s24 = smov %s2145_s25 }
 0x91e   : > { %s2991_s25 = smov %s2993_s12  ;;  %25 = sbr.rel (!%p23_p8) target bundleno = 11 (0xb), region = 118 }
 0x925   :  { %1434 = vsyncpa [#allocation5], 1 }
 0x926   :  { %1436 = vsyncpa [#allocation5 + $0x1], 1 }
 0x927   :  { %1437 = vsyncpa [#allocation8], 1 }
 0x928   :  { %1438 = vsyncpa [#allocation11], 1 }
 0x929   :  { %1439 = vsyncpa [#allocation6], 1 }
 0x92a   :  { %1441 = vsyncpa [#allocation6 + $0x1], 1 }
 0x92b   :  { %1442 = vsyncpa [#allocation14], 1 }

</bundles_post_ra>
